<compile_context>
chip_gen: v7x
topology: tpu7x:2x2x1
jax: 0.10.0
libtpu: 0.0.40
codegen_flags: <defaults>
</compile_context>

<pallas_src>
import functools

import jax
import jax.numpy as jnp
from jax.experimental import pallas as pl
from jax.experimental.pallas import tpu as pltpu


K_FC = 2592          # 32 * 9 * 9 (NCHW flatten of conv2 output)
K_FC_PAD = 2688      # 21 * 128  (lane-aligned contraction dim for fc)
N_HEAD_PAD = 128     # head output padded to one full lane width


def _round_up(x, m):
    return (x + m - 1) // m * m


def _pick_tile(m, max_tile, align):
    """Return (tile, padded_m): tile % align == 0 and padded_m % tile == 0."""
    if m >= max_tile:
        return max_tile, _round_up(m, max_tile)
    t = _round_up(m, align)
    return t, t


# ----------------------------------------------------------------------------
# Pallas kernel 1: transposed conv matmul  out^T = relu(W @ patches^T + b)
# ----------------------------------------------------------------------------
def _conv_mm_kernel(w_ref, p_ref, b_ref, o_ref):
    # w_ref: (OC, K) bf16, p_ref: (K, TM) bf16, b_ref: (OC, 1) f32, o_ref: (OC, TM) bf16
    acc = jnp.dot(w_ref[...], p_ref[...], preferred_element_type=jnp.float32)
    acc = jnp.maximum(acc + b_ref[...], 0.0)
    o_ref[...] = acc.astype(o_ref.dtype)


def conv_matmul_T(w, patches_t, b):
    """w: (OC, K) bf16, patches_t: (K, M) bf16, b: (OC, 1) f32 -> (OC, M) bf16."""
    oc, k = w.shape
    k2, m = patches_t.shape
    assert k == k2
    tm, m_pad = _pick_tile(m, max_tile=512, align=128)
    if m_pad != m:
        patches_t = jnp.pad(patches_t, ((0, 0), (0, m_pad - m)))
    out = pl.pallas_call(
        _conv_mm_kernel,
        out_shape=jax.ShapeDtypeStruct((oc, m_pad), jnp.bfloat16),
        grid_spec=pltpu.PrefetchScalarGridSpec(
            num_scalar_prefetch=0,
            grid=(m_pad // tm,),
            in_specs=[
                pl.BlockSpec((oc, k), lambda i: (0, 0)),   # weights resident
                pl.BlockSpec((k, tm), lambda i: (0, i)),   # patch tile along lanes
                pl.BlockSpec((oc, 1), lambda i: (0, 0)),   # bias
            ],
            out_specs=pl.BlockSpec((oc, tm), lambda i: (0, i)),
        ),
        compiler_params=pltpu.CompilerParams(
            dimension_semantics=("parallel",),
        ),
    )(w, patches_t, b)
    return out[:, :m]


# ----------------------------------------------------------------------------
# Pallas kernel 2: fused fc + head  (hidden activation stays in VMEM/vregs)
# ----------------------------------------------------------------------------
def _fc_head_kernel(x_ref, wfc_ref, bfc_ref, wh_ref, bh_ref, o_ref):
    # x_ref: (TB, Kp) bf16, wfc_ref: (Kp, 256) bf16, wh_ref: (256, 128) bf16
    h = jnp.dot(x_ref[...], wfc_ref[...], preferred_element_type=jnp.float32)
    h = jnp.maximum(h + bfc_ref[...], 0.0)                        # (TB, 256) f32
    q = jnp.dot(h.astype(jnp.bfloat16), wh_ref[...],
                preferred_element_type=jnp.float32)
    o_ref[...] = (q + bh_ref[...]).astype(o_ref.dtype)


def fused_fc_head(x, w_fc, b_fc, w_head, b_head):
    """x: (B, K_FC_PAD) bf16 -> (B, N_HEAD_PAD) f32."""
    bsz, kp = x.shape
    n1 = w_fc.shape[1]
    n2 = w_head.shape[1]
    tb, b_pad = _pick_tile(bsz, max_tile=256, align=8)
    if b_pad != bsz:
        x = jnp.pad(x, ((0, b_pad - bsz), (0, 0)))
    out = pl.pallas_call(
        _fc_head_kernel,
        out_shape=jax.ShapeDtypeStruct((b_pad, n2), jnp.float32),
        grid_spec=pltpu.PrefetchScalarGridSpec(
            num_scalar_prefetch=0,
            grid=(b_pad // tb,),
            in_specs=[
                pl.BlockSpec((tb, kp), lambda i: (i, 0)),
                pl.BlockSpec((kp, n1), lambda i: (0, 0)),
                pl.BlockSpec((1, n1), lambda i: (0, 0)),
                pl.BlockSpec((n1, n2), lambda i: (0, 0)),
                pl.BlockSpec((1, n2), lambda i: (0, 0)),
            ],
            out_specs=pl.BlockSpec((tb, n2), lambda i: (i, 0)),
        ),
        compiler_params=pltpu.CompilerParams(
            dimension_semantics=("parallel",),
        ),
    )(x, w_fc, b_fc, w_head, b_head)
    return out[:bsz]


# ----------------------------------------------------------------------------
# im2col glue (plain JAX, channel-major layout, no minor-dim transposes)
# ----------------------------------------------------------------------------
def im2col_T(x_cbhw, k, s):
    """x in (C, B, H, W) layout -> patches^T of shape (C*k*k, B*OH*OW).

    K ordering is (C, ki, kj), matching conv_w.reshape(OC, C*k*k);
    M ordering is (B, OH, OW)."""
    c, b, h, w = x_cbhw.shape
    oh = (h - k) // s + 1
    ow = (w - k) // s + 1
    cols = []
    for i in range(k):
        for j in range(k):
            cols.append(x_cbhw[:, :, i:i + oh * s:s, j:j + ow * s:s])  # (C,B,OH,OW)
    p = jnp.stack(cols, axis=1)                      # (C, k*k, B, OH, OW)
    p = p.reshape(c * k * k, b * oh * ow)            # (K, M)
    return p, oh, ow


# ----------------------------------------------------------------------------
# Params (pre-reshaped / pre-transposed / pre-padded, bf16 matmul operands)
# ----------------------------------------------------------------------------
def init_params(key, action_space):
    ks = jax.random.split(key, 8)
    scale = 0.05
    conv1_w = scale * jax.random.normal(ks[0], (16, 4, 8, 8), jnp.float32)
    conv1_b = scale * jax.random.normal(ks[1], (16,), jnp.float32)
    conv2_w = scale * jax.random.normal(ks[2], (32, 16, 4, 4), jnp.float32)
    conv2_b = scale * jax.random.normal(ks[3], (32,), jnp.float32)
    fc_w = scale * jax.random.normal(ks[4], (256, K_FC), jnp.float32)
    fc_b = scale * jax.random.normal(ks[5], (256,), jnp.float32)
    head_w = scale * jax.random.normal(ks[6], (action_space, 256), jnp.float32)
    head_b = scale * jax.random.normal(ks[7], (action_space,), jnp.float32)

    w_fc_t = jnp.zeros((K_FC_PAD, 256), jnp.bfloat16)
    w_fc_t = w_fc_t.at[:K_FC, :].set(fc_w.T.astype(jnp.bfloat16))
    w_head_t = jnp.zeros((256, N_HEAD_PAD), jnp.bfloat16)
    w_head_t = w_head_t.at[:, :action_space].set(head_w.T.astype(jnp.bfloat16))
    b_head_p = jnp.zeros((1, N_HEAD_PAD), jnp.float32)
    b_head_p = b_head_p.at[0, :action_space].set(head_b)

    return {
        "w1": conv1_w.reshape(16, -1).astype(jnp.bfloat16),   # (16, 256)
        "b1": conv1_b.reshape(16, 1),
        "w2": conv2_w.reshape(32, -1).astype(jnp.bfloat16),   # (32, 256)
        "b2": conv2_b.reshape(32, 1),
        "w_fc_t": w_fc_t,                                     # (2688, 256) bf16
        "b_fc": fc_b.reshape(1, 256),
        "w_head_t": w_head_t,                                 # (256, 128) bf16
        "b_head": b_head_p,                                   # (1, 128)
    }


# ----------------------------------------------------------------------------
# DQN forward
# ----------------------------------------------------------------------------
def dqn_forward(params, x, action_space):
    """x: (B, 4, 84, 84) f32 NCHW -> (B, action_space) f32."""
    b = x.shape[0]
    # Channel-major (C, B, H, W) activation layout between conv layers.
    xc = jnp.transpose(x, (1, 0, 2, 3)).astype(jnp.bfloat16)          # (4, B, 84, 84)

    # conv1: 8x8 stride 4 -> (16, B, 20, 20)
    p1, oh1, ow1 = im2col_T(xc, 8, 4)                                 # (256, B*400)
    y1 = conv_matmul_T(params["w1"], p1, params["b1"])                # (16, B*400)
    y1 = y1.reshape(16, b, oh1, ow1)

    # conv2: 4x4 stride 2 -> (32, B, 9, 9)
    p2, oh2, ow2 = im2col_T(y1, 4, 2)                                 # (256, B*81)
    y2 = conv_matmul_T(params["w2"], p2, params["b2"])                # (32, B*81)
    y2 = y2.reshape(32, b, oh2, ow2)

    # Flatten in PyTorch NCHW order: (B, 2592), pad contraction dim to 2688.
    flat = jnp.transpose(y2, (1, 0, 2, 3)).reshape(b, -1)             # (B, 2592) bf16
    flat = jnp.pad(flat, ((0, 0), (0, K_FC_PAD - flat.shape[1])))

    # Fused fc + head; slice padded head columns back to action_space.
    q = fused_fc_head(flat, params["w_fc_t"], params["b_fc"],
                      params["w_head_t"], params["b_head"])           # (B, 128) f32
    return q[:, :action_space]


if __name__ == "__main__":
    action_space = 6
    key = jax.random.PRNGKey(0)
    kp, kx = jax.random.split(key)

    params = init_params(kp, action_space)
    # fc expects 2592 = 32*9*9 features => input spatial must be 84x84.
    x = jax.random.normal(kx, (2, 4, 84, 84), jnp.float32)

    fwd = jax.jit(functools.partial(dqn_forward, action_space=action_space))
    out = fwd(params, x)
    out = jax.block_until_ready(out)
    assert out.shape == (2, action_space), out.shape
    print("KERNEL_OK")
</pallas_src>

<mosaic_0001>
module attributes {stable_mosaic.version = 11 : i64} {
  func.func @_conv_mm_kernel(%arg0: i32, %arg1: memref<16x256xbf16, #tpu.memory_space<vmem>>, %arg2: memref<256x512xbf16, #tpu.memory_space<vmem>>, %arg3: memref<16x1xf32, #tpu.memory_space<vmem>>, %arg4: memref<16x512xbf16, #tpu.memory_space<vmem>>) attributes {dimension_semantics = [#tpu.dimension_semantics<parallel>], iteration_bounds = array<i64: 2>, scalar_prefetch = 0 : i64, scratch_operands = 0 : i64, tpu.core_type = #tpu.core_type<tc>, window_params = [{pipeline_mode = #tpu.pipeline_mode<synchronous>, transform_indices = @transform_0, window_bounds = array<i64: 16, 256>}, {transform_indices = @transform_1, window_bounds = array<i64: 256, 512>}, {pipeline_mode = #tpu.pipeline_mode<synchronous>, transform_indices = @transform_2, window_bounds = array<i64: 16, 1>}, {transform_indices = @transform_3, window_bounds = array<i64: 16, 512>}]} {
    %c0 = arith.constant 0 : index
    %c0_0 = arith.constant 0 : index
    %0 = vector.load %arg1[%c0, %c0_0] : memref<16x256xbf16, #tpu.memory_space<vmem>>, vector<16x256xbf16>
    %c0_1 = arith.constant 0 : index
    %c0_2 = arith.constant 0 : index
    %1 = vector.load %arg2[%c0_1, %c0_2] : memref<256x512xbf16, #tpu.memory_space<vmem>>, vector<256x512xbf16>
    %cst = arith.constant dense<0.000000e+00> : vector<16x512xf32>
    %2 = tpu.matmul %0, %1, %cst {dimension_numbers = #tpu.dot_dimension_numbers<[1], [0], [0], [1], [0, 0, 1, 1], [], []>} : vector<16x256xbf16>, vector<256x512xbf16>, vector<16x512xf32> -> vector<16x512xf32>
    %c0_3 = arith.constant 0 : index
    %c0_4 = arith.constant 0 : index
    %3 = vector.load %arg3[%c0_3, %c0_4] : memref<16x1xf32, #tpu.memory_space<vmem>>, vector<16x1xf32>
    %4 = vector.broadcast %3 : vector<16x1xf32> to vector<16x512xf32>
    %5 = arith.addf %2, %4 : vector<16x512xf32>
    %cst_5 = arith.constant 0.000000e+00 : f32
    %6 = vector.broadcast %cst_5 : f32 to vector<16x512xf32>
    %7 = arith.maximumf %5, %6 : vector<16x512xf32>
    %8 = arith.truncf %7 : vector<16x512xf32> to vector<16x512xbf16>
    %c0_6 = arith.constant 0 : index
    %c0_7 = arith.constant 0 : index
    %9 = vector.load %arg4[%c0_6, %c0_7] : memref<16x512xbf16, #tpu.memory_space<vmem>>, vector<16x512xbf16>
    tpu.vector_store %arg4[%c0_6, %c0_7], %8 {strides = array<i32>} : memref<16x512xbf16, #tpu.memory_space<vmem>>, vector<16x512xbf16>,
    return
  }
  func.func @transform_0(%arg0: i32) -> (i32, i32) {
    %c0_i32 = arith.constant 0 : i32
    %c0_i32_0 = arith.constant 0 : i32
    %c0_i32_1 = arith.constant 0 : i32
    return %c0_i32, %c0_i32_0 : i32, i32
  }
  func.func @transform_1(%arg0: i32) -> (i32, i32) {
    %c0_i32 = arith.constant 0 : i32
    %c0_i32_0 = arith.constant 0 : i32
    return %c0_i32, %arg0 : i32, i32
  }
  func.func @transform_2(%arg0: i32) -> (i32, i32) {
    %c0_i32 = arith.constant 0 : i32
    %c0_i32_0 = arith.constant 0 : i32
    %c0_i32_1 = arith.constant 0 : i32
    return %c0_i32, %c0_i32_0 : i32, i32
  }
  func.func @transform_3(%arg0: i32) -> (i32, i32) {
    %c0_i32 = arith.constant 0 : i32
    %c0_i32_0 = arith.constant 0 : i32
    return %c0_i32, %arg0 : i32, i32
  }
}

module attributes {stable_mosaic.version = 11 : i64} {
  func.func @_conv_mm_kernel(%arg0: i32, %arg1: memref<32x256xbf16, #tpu.memory_space<vmem>>, %arg2: memref<256x256xbf16, #tpu.memory_space<vmem>>, %arg3: memref<32x1xf32, #tpu.memory_space<vmem>>, %arg4: memref<32x256xbf16, #tpu.memory_space<vmem>>) attributes {dimension_semantics = [#tpu.dimension_semantics<parallel>], iteration_bounds = array<i64: 1>, scalar_prefetch = 0 : i64, scratch_operands = 0 : i64, tpu.core_type = #tpu.core_type<tc>, window_params = [{pipeline_mode = #tpu.pipeline_mode<synchronous>, transform_indices = @transform_0, window_bounds = array<i64: 32, 256>}, {transform_indices = @transform_1, window_bounds = array<i64: 256, 256>}, {pipeline_mode = #tpu.pipeline_mode<synchronous>, transform_indices = @transform_2, window_bounds = array<i64: 32, 1>}, {transform_indices = @transform_3, window_bounds = array<i64: 32, 256>}]} {
    %c0 = arith.constant 0 : index
    %c0_0 = arith.constant 0 : index
    %0 = vector.load %arg1[%c0, %c0_0] : memref<32x256xbf16, #tpu.memory_space<vmem>>, vector<32x256xbf16>
    %c0_1 = arith.constant 0 : index
    %c0_2 = arith.constant 0 : index
    %1 = vector.load %arg2[%c0_1, %c0_2] : memref<256x256xbf16, #tpu.memory_space<vmem>>, vector<256x256xbf16>
    %cst = arith.constant dense<0.000000e+00> : vector<32x256xf32>
    %2 = tpu.matmul %0, %1, %cst {dimension_numbers = #tpu.dot_dimension_numbers<[1], [0], [0], [1], [0, 0, 1, 1], [], []>} : vector<32x256xbf16>, vector<256x256xbf16>, vector<32x256xf32> -> vector<32x256xf32>
    %c0_3 = arith.constant 0 : index
    %c0_4 = arith.constant 0 : index
    %3 = vector.load %arg3[%c0_3, %c0_4] : memref<32x1xf32, #tpu.memory_space<vmem>>, vector<32x1xf32>
    %4 = vector.broadcast %3 : vector<32x1xf32> to vector<32x256xf32>
    %5 = arith.addf %2, %4 : vector<32x256xf32>
    %cst_5 = arith.constant 0.000000e+00 : f32
    %6 = vector.broadcast %cst_5 : f32 to vector<32x256xf32>
    %7 = arith.maximumf %5, %6 : vector<32x256xf32>
    %8 = arith.truncf %7 : vector<32x256xf32> to vector<32x256xbf16>
    %c0_6 = arith.constant 0 : index
    %c0_7 = arith.constant 0 : index
    %9 = vector.load %arg4[%c0_6, %c0_7] : memref<32x256xbf16, #tpu.memory_space<vmem>>, vector<32x256xbf16>
    tpu.vector_store %arg4[%c0_6, %c0_7], %8 {strides = array<i32>} : memref<32x256xbf16, #tpu.memory_space<vmem>>, vector<32x256xbf16>,
    return
  }
  func.func @transform_0(%arg0: i32) -> (i32, i32) {
    %c0_i32 = arith.constant 0 : i32
    %c0_i32_0 = arith.constant 0 : i32
    %c0_i32_1 = arith.constant 0 : i32
    return %c0_i32, %c0_i32_0 : i32, i32
  }
  func.func @transform_1(%arg0: i32) -> (i32, i32) {
    %c0_i32 = arith.constant 0 : i32
    %c0_i32_0 = arith.constant 0 : i32
    return %c0_i32, %arg0 : i32, i32
  }
  func.func @transform_2(%arg0: i32) -> (i32, i32) {
    %c0_i32 = arith.constant 0 : i32
    %c0_i32_0 = arith.constant 0 : i32
    %c0_i32_1 = arith.constant 0 : i32
    return %c0_i32, %c0_i32_0 : i32, i32
  }
  func.func @transform_3(%arg0: i32) -> (i32, i32) {
    %c0_i32 = arith.constant 0 : i32
    %c0_i32_0 = arith.constant 0 : i32
    return %c0_i32, %arg0 : i32, i32
  }
}

module attributes {stable_mosaic.version = 11 : i64} {
  func.func @_fc_head_kernel(%arg0: i32, %arg1: memref<8x2688xbf16, #tpu.memory_space<vmem>>, %arg2: memref<2688x256xbf16, #tpu.memory_space<vmem>>, %arg3: memref<1x256xf32, #tpu.memory_space<vmem>>, %arg4: memref<256x128xbf16, #tpu.memory_space<vmem>>, %arg5: memref<1x128xf32, #tpu.memory_space<vmem>>, %arg6: memref<8x128xf32, #tpu.memory_space<vmem>>) attributes {dimension_semantics = [#tpu.dimension_semantics<parallel>], iteration_bounds = array<i64: 1>, scalar_prefetch = 0 : i64, scratch_operands = 0 : i64, tpu.core_type = #tpu.core_type<tc>, window_params = [{transform_indices = @transform_0, window_bounds = array<i64: 8, 2688>}, {pipeline_mode = #tpu.pipeline_mode<synchronous>, transform_indices = @transform_1, window_bounds = array<i64: 2688, 256>}, {pipeline_mode = #tpu.pipeline_mode<synchronous>, transform_indices = @transform_2, window_bounds = array<i64: 1, 256>}, {pipeline_mode = #tpu.pipeline_mode<synchronous>, transform_indices = @transform_3, window_bounds = array<i64: 256, 128>}, {pipeline_mode = #tpu.pipeline_mode<synchronous>, transform_indices = @transform_4, window_bounds = array<i64: 1, 128>}, {transform_indices = @transform_5, window_bounds = array<i64: 8, 128>}]} {
    %c0 = arith.constant 0 : index
    %c0_0 = arith.constant 0 : index
    %0 = vector.load %arg1[%c0, %c0_0] : memref<8x2688xbf16, #tpu.memory_space<vmem>>, vector<8x2688xbf16>
    %c0_1 = arith.constant 0 : index
    %c0_2 = arith.constant 0 : index
    %1 = vector.load %arg2[%c0_1, %c0_2] : memref<2688x256xbf16, #tpu.memory_space<vmem>>, vector<2688x256xbf16>
    %cst = arith.constant dense<0.000000e+00> : vector<8x256xf32>
    %2 = tpu.matmul %0, %1, %cst {dimension_numbers = #tpu.dot_dimension_numbers<[1], [0], [0], [1], [0, 0, 1, 1], [], []>} : vector<8x2688xbf16>, vector<2688x256xbf16>, vector<8x256xf32> -> vector<8x256xf32>
    %c0_3 = arith.constant 0 : index
    %c0_4 = arith.constant 0 : index
    %3 = vector.load %arg3[%c0_3, %c0_4] : memref<1x256xf32, #tpu.memory_space<vmem>>, vector<1x256xf32>
    %4 = vector.broadcast %3 : vector<1x256xf32> to vector<8x256xf32>
    %5 = arith.addf %2, %4 : vector<8x256xf32>
    %cst_5 = arith.constant 0.000000e+00 : f32
    %6 = vector.broadcast %cst_5 : f32 to vector<8x256xf32>
    %7 = arith.maximumf %5, %6 : vector<8x256xf32>
    %8 = arith.truncf %7 : vector<8x256xf32> to vector<8x256xbf16>
    %c0_6 = arith.constant 0 : index
    %c0_7 = arith.constant 0 : index
    %9 = vector.load %arg4[%c0_6, %c0_7] : memref<256x128xbf16, #tpu.memory_space<vmem>>, vector<256x128xbf16>
    %cst_8 = arith.constant dense<0.000000e+00> : vector<8x128xf32>
    %10 = tpu.matmul %8, %9, %cst_8 {dimension_numbers = #tpu.dot_dimension_numbers<[1], [0], [0], [1], [0, 0, 1, 1], [], []>} : vector<8x256xbf16>, vector<256x128xbf16>, vector<8x128xf32> -> vector<8x128xf32>
    %c0_9 = arith.constant 0 : index
    %c0_10 = arith.constant 0 : index
    %11 = vector.load %arg5[%c0_9, %c0_10] : memref<1x128xf32, #tpu.memory_space<vmem>>, vector<1x128xf32>
    %12 = vector.broadcast %11 : vector<1x128xf32> to vector<8x128xf32>
    %13 = arith.addf %10, %12 : vector<8x128xf32>
    %c0_11 = arith.constant 0 : index
    %c0_12 = arith.constant 0 : index
    %14 = vector.load %arg6[%c0_11, %c0_12] : memref<8x128xf32, #tpu.memory_space<vmem>>, vector<8x128xf32>
    tpu.vector_store %arg6[%c0_11, %c0_12], %13 {strides = array<i32>} : memref<8x128xf32, #tpu.memory_space<vmem>>, vector<8x128xf32>,
    return
  }
  func.func @transform_0(%arg0: i32) -> (i32, i32) {
    %c0_i32 = arith.constant 0 : i32
    %c0_i32_0 = arith.constant 0 : i32
    return %arg0, %c0_i32 : i32, i32
  }
  func.func @transform_1(%arg0: i32) -> (i32, i32) {
    %c0_i32 = arith.constant 0 : i32
    %c0_i32_0 = arith.constant 0 : i32
    %c0_i32_1 = arith.constant 0 : i32
    return %c0_i32, %c0_i32_0 : i32, i32
  }
  func.func @transform_2(%arg0: i32) -> (i32, i32) {
    %c0_i32 = arith.constant 0 : i32
    %c0_i32_0 = arith.constant 0 : i32
    %c0_i32_1 = arith.constant 0 : i32
    return %c0_i32, %c0_i32_0 : i32, i32
  }
  func.func @transform_3(%arg0: i32) -> (i32, i32) {
    %c0_i32 = arith.constant 0 : i32
    %c0_i32_0 = arith.constant 0 : i32
    %c0_i32_1 = arith.constant 0 : i32
    return %c0_i32, %c0_i32_0 : i32, i32
  }
  func.func @transform_4(%arg0: i32) -> (i32, i32) {
    %c0_i32 = arith.constant 0 : i32
    %c0_i32_0 = arith.constant 0 : i32
    %c0_i32_1 = arith.constant 0 : i32
    return %c0_i32, %c0_i32_0 : i32, i32
  }
  func.func @transform_5(%arg0: i32) -> (i32, i32) {
    %c0_i32 = arith.constant 0 : i32
    %c0_i32_0 = arith.constant 0 : i32
    return %arg0, %c0_i32 : i32, i32
  }
}

</mosaic_0001>

<bundles_post_ra>
// kernel: dqn_forward.3
= control target key start
LH: loop header
LB: loop body
LE: loop exit
PB: predicated region body
PF: predicated region fallthrough
CT: control target
= control target key end

     0   :  { %s1193_s12 = smov 0   ;;  %s1195_s13 = smov 0   ;;  %s1467_s0 = inlined_call_operand.vmem [shape: bf16[16,256], index: 0, kind: input, shape index: {}]   ;;  %s1468_s1 = inlined_call_operand.vmem [shape: bf16[256,1024], index: 1, kind: input, shape index: {}]   ;;  %s1469_s2 = inlined_call_operand.vmem [shape: f32[16,1], index: 2, kind: input, shape index: {}]   ;;  %s1470_s3 = inlined_call_operand.vmem [shape: bf16[16,1024], index: 3, kind: output, shape index: {}]  }
   0x1   :  { %s1197_s14 = smov 0  }
   0x2 LB: > { %s932_s15 = sadd.s32 4294967295, %s1170_s14   ;;  %s1210_s16 = sadd.s32 1, %s1170_s14   ;;  %s1170_s14 = sphi %s1197_s14, %s1474_s14   ;;  %s1166_s13 = sphi %s1195_s13, %s1473_s13   ;;  %s1162_s12 = sphi %s1193_s12, %s1472_s12  }
   0x3   : > { %s38_s17 = ssub.s32 %s1170_s14, %s1210_s16  ;;  %s41_s18 = sadd.s32 1, %s1166_s13 }
   0x4   : > { %p39_p0 = scmp.eq.s32.totalorder %s38_s17, 0  ;;  %p48_p1 = scmp.ne.s32.totalorder %s1166_s13, %s1162_s12 }
   0x5   : > { %p49_p2 = scmp.eq.s32.totalorder %s1170_s14, 0  ;;  %p99_p3 = scmp.eq.s32.totalorder %s932_s15, 1 }
   0x6   : > { %s1221_s19 = scalar_select %p39_p0, %s1166_s13, %s41_s18  }
   0x7   : > { %p50_p4 = por %p49_p2, %p48_p1  ;;  %p1223_p5 = por %p99_p3, %p48_p1 }
   0x8   : > { %p935_p6 = scmp.ge.s32.totalorder %s1170_s14, 2 }
   0xa   : > { %127 = sbr.rel (%p935_p6) target bundleno = 53 (0x35), region = 24 }
  0x11   : > { %130 = sbr.rel (!%p50_p4) target bundleno = 53 (0x35), region = 28  ;;  %s132_s21 = sand.u32 (%p50_p4), 1, %s1166_s13  }
  0x12   : > { %s1017_s22 = sshll.u32 (%p50_p4), %s1170_s14, 4  ;;  %s936_s23 = sshll.u32 (%p50_p4), %s132_s21, 9 }
  0x13   : > { %s1233_s26 = scalar_lea.vmem (%p50_p4), %s1468_s1, %s1017_s22  ;;  %s1238_s27 = scalar_lea.vmem (%p50_p4), [#allocation2], %s936_s23 }
  0x14   : > { %v150_v0 = vld [vmem:[%s1233_s26] sm:$0xff] (%p50_p4)  ;;  %v152_v1 = vld [vmem:[%s1233_s26 + $0x8] sm:$0xff] (%p50_p4) }
  0x15   : > { %v154_v2 = vld [vmem:[%s1233_s26 + $0x20] sm:$0xff] (%p50_p4)  ;;  %151 = vst [vmem:[%s1238_s27] sm:$0xff] (%p50_p4), %v150_v0  ;;  %153 = vst [vmem:[%s1238_s27 + $0x8] sm:$0xff] (%p50_p4), %v152_v1  ;;  %v156_v3 = vld [vmem:[%s1233_s26 + $0x28] sm:$0xff] (%p50_p4) }
  0x16   : > { %155 = vst [vmem:[%s1238_s27 + $0x10] sm:$0xff] (%p50_p4), %v154_v2  ;;  %v158_v4 = vld [vmem:[%s1233_s26 + $0x40] sm:$0xff] (%p50_p4)  ;;  %v160_v5 = vld [vmem:[%s1233_s26 + $0x48] sm:$0xff] (%p50_p4)  ;;  %157 = vst [vmem:[%s1238_s27 + $0x18] sm:$0xff] (%p50_p4), %v156_v3 }
  0x17   : > { %159 = vst [vmem:[%s1238_s27 + $0x20] sm:$0xff] (%p50_p4), %v158_v4  ;;  %161 = vst [vmem:[%s1238_s27 + $0x28] sm:$0xff] (%p50_p4), %v160_v5  ;;  %v162_v6 = vld [vmem:[%s1233_s26 + $0x60] sm:$0xff] (%p50_p4)  ;;  %v164_v7 = vld [vmem:[%s1233_s26 + $0x68] sm:$0xff] (%p50_p4) }
  0x18   : > { %v166_v8 = vld [vmem:[%s1233_s26 + $0x80] sm:$0xff]  ;;  %163 = vst [vmem:[%s1238_s27 + $0x30] sm:$0xff] %v162_v6  ;;  %165 = vst [vmem:[%s1238_s27 + $0x38] sm:$0xff] %v164_v7  ;;  %v168_v9 = vld [vmem:[%s1233_s26 + $0x88] sm:$0xff] }
  0x19   : > { %167 = vst [vmem:[%s1238_s27 + $0x40] sm:$0xff] %v166_v8  ;;  %v170_v10 = vld [vmem:[%s1233_s26 + $0xa0] sm:$0xff]  ;;  %v172_v11 = vld [vmem:[%s1233_s26 + $0xa8] sm:$0xff]  ;;  %169 = vst [vmem:[%s1238_s27 + $0x48] sm:$0xff] %v168_v9 }
  0x1a   : > { %171 = vst [vmem:[%s1238_s27 + $0x50] sm:$0xff] %v170_v10  ;;  %173 = vst [vmem:[%s1238_s27 + $0x58] sm:$0xff] %v172_v11  ;;  %v174_v12 = vld [vmem:[%s1233_s26 + $0xc0] sm:$0xff]  ;;  %v176_v13 = vld [vmem:[%s1233_s26 + $0xc8] sm:$0xff] }
  0x1b   : > { %v178_v14 = vld [vmem:[%s1233_s26 + $0xe0] sm:$0xff]  ;;  %175 = vst [vmem:[%s1238_s27 + $0x60] sm:$0xff] %v174_v12  ;;  %177 = vst [vmem:[%s1238_s27 + $0x68] sm:$0xff] %v176_v13  ;;  %v180_v15 = vld [vmem:[%s1233_s26 + $0xe8] sm:$0xff] }
  0x1c   : > { %179 = vst [vmem:[%s1238_s27 + $0x70] sm:$0xff] %v178_v14  ;;  %v182_v16 = vld [vmem:[%s1233_s26 + $0x100] sm:$0xff]  ;;  %v184_v17 = vld [vmem:[%s1233_s26 + $0x108] sm:$0xff]  ;;  %181 = vst [vmem:[%s1238_s27 + $0x78] sm:$0xff] %v180_v15 }
  0x1d   : > { %183 = vst [vmem:[%s1238_s27 + $0x80] sm:$0xff] %v182_v16  ;;  %185 = vst [vmem:[%s1238_s27 + $0x88] sm:$0xff] %v184_v17  ;;  %v186_v18 = vld [vmem:[%s1233_s26 + $0x120] sm:$0xff]  ;;  %v188_v19 = vld [vmem:[%s1233_s26 + $0x128] sm:$0xff] }
  0x1e   : > { %v190_v20 = vld [vmem:[%s1233_s26 + $0x140] sm:$0xff]  ;;  %187 = vst [vmem:[%s1238_s27 + $0x90] sm:$0xff] %v186_v18  ;;  %189 = vst [vmem:[%s1238_s27 + $0x98] sm:$0xff] %v188_v19  ;;  %v192_v21 = vld [vmem:[%s1233_s26 + $0x148] sm:$0xff] }
  0x1f   : > { %191 = vst [vmem:[%s1238_s27 + $0xa0] sm:$0xff] %v190_v20  ;;  %v194_v22 = vld [vmem:[%s1233_s26 + $0x160] sm:$0xff]  ;;  %v196_v23 = vld [vmem:[%s1233_s26 + $0x168] sm:$0xff]  ;;  %193 = vst [vmem:[%s1238_s27 + $0xa8] sm:$0xff] %v192_v21 }
  0x20   : > { %195 = vst [vmem:[%s1238_s27 + $0xb0] sm:$0xff] %v194_v22  ;;  %197 = vst [vmem:[%s1238_s27 + $0xb8] sm:$0xff] %v196_v23  ;;  %v198_v24 = vld [vmem:[%s1233_s26 + $0x180] sm:$0xff]  ;;  %v200_v25 = vld [vmem:[%s1233_s26 + $0x188] sm:$0xff] }
  0x21   : > { %v202_v26 = vld [vmem:[%s1233_s26 + $0x1a0] sm:$0xff]  ;;  %199 = vst [vmem:[%s1238_s27 + $0xc0] sm:$0xff] %v198_v24  ;;  %201 = vst [vmem:[%s1238_s27 + $0xc8] sm:$0xff] %v200_v25  ;;  %v204_v27 = vld [vmem:[%s1233_s26 + $0x1a8] sm:$0xff] }
  0x22   : > { %203 = vst [vmem:[%s1238_s27 + $0xd0] sm:$0xff] %v202_v26  ;;  %v206_v28 = vld [vmem:[%s1233_s26 + $0x1c0] sm:$0xff]  ;;  %v208_v29 = vld [vmem:[%s1233_s26 + $0x1c8] sm:$0xff]  ;;  %205 = vst [vmem:[%s1238_s27 + $0xd8] sm:$0xff] %v204_v27 }
  0x23   : > { %207 = vst [vmem:[%s1238_s27 + $0xe0] sm:$0xff] %v206_v28  ;;  %209 = vst [vmem:[%s1238_s27 + $0xe8] sm:$0xff] %v208_v29  ;;  %v210_v30 = vld [vmem:[%s1233_s26 + $0x1e0] sm:$0xff]  ;;  %v212_v31 = vld [vmem:[%s1233_s26 + $0x1e8] sm:$0xff] }
  0x24   : > { %v214_v32 = vld [vmem:[%s1233_s26 + $0x200] sm:$0xff]  ;;  %211 = vst [vmem:[%s1238_s27 + $0xf0] sm:$0xff] %v210_v30  ;;  %213 = vst [vmem:[%s1238_s27 + $0xf8] sm:$0xff] %v212_v31  ;;  %v216_v33 = vld [vmem:[%s1233_s26 + $0x208] sm:$0xff] }
  0x25   : > { %215 = vst [vmem:[%s1238_s27 + $0x100] sm:$0xff] %v214_v32  ;;  %v218_v34 = vld [vmem:[%s1233_s26 + $0x220] sm:$0xff]  ;;  %v220_v35 = vld [vmem:[%s1233_s26 + $0x228] sm:$0xff]  ;;  %217 = vst [vmem:[%s1238_s27 + $0x108] sm:$0xff] %v216_v33 }
  0x26   : > { %219 = vst [vmem:[%s1238_s27 + $0x110] sm:$0xff] %v218_v34  ;;  %221 = vst [vmem:[%s1238_s27 + $0x118] sm:$0xff] %v220_v35  ;;  %v222_v36 = vld [vmem:[%s1233_s26 + $0x240] sm:$0xff]  ;;  %v224_v37 = vld [vmem:[%s1233_s26 + $0x248] sm:$0xff] }
  0x27   : > { %v226_v38 = vld [vmem:[%s1233_s26 + $0x260] sm:$0xff]  ;;  %223 = vst [vmem:[%s1238_s27 + $0x120] sm:$0xff] %v222_v36  ;;  %225 = vst [vmem:[%s1238_s27 + $0x128] sm:$0xff] %v224_v37  ;;  %v228_v39 = vld [vmem:[%s1233_s26 + $0x268] sm:$0xff] }
  0x28   : > { %227 = vst [vmem:[%s1238_s27 + $0x130] sm:$0xff] %v226_v38  ;;  %v230_v40 = vld [vmem:[%s1233_s26 + $0x280] sm:$0xff]  ;;  %v232_v41 = vld [vmem:[%s1233_s26 + $0x288] sm:$0xff]  ;;  %229 = vst [vmem:[%s1238_s27 + $0x138] sm:$0xff] %v228_v39 }
  0x29   : > { %231 = vst [vmem:[%s1238_s27 + $0x140] sm:$0xff] %v230_v40  ;;  %233 = vst [vmem:[%s1238_s27 + $0x148] sm:$0xff] %v232_v41  ;;  %v234_v42 = vld [vmem:[%s1233_s26 + $0x2a0] sm:$0xff]  ;;  %v236_v43 = vld [vmem:[%s1233_s26 + $0x2a8] sm:$0xff] }
  0x2a   : > { %v238_v44 = vld [vmem:[%s1233_s26 + $0x2c0] sm:$0xff]  ;;  %235 = vst [vmem:[%s1238_s27 + $0x150] sm:$0xff] %v234_v42  ;;  %237 = vst [vmem:[%s1238_s27 + $0x158] sm:$0xff] %v236_v43  ;;  %v240_v45 = vld [vmem:[%s1233_s26 + $0x2c8] sm:$0xff] }
  0x2b   : > { %239 = vst [vmem:[%s1238_s27 + $0x160] sm:$0xff] %v238_v44  ;;  %v242_v46 = vld [vmem:[%s1233_s26 + $0x2e0] sm:$0xff]  ;;  %v244_v47 = vld [vmem:[%s1233_s26 + $0x2e8] sm:$0xff]  ;;  %241 = vst [vmem:[%s1238_s27 + $0x168] sm:$0xff] %v240_v45 }
  0x2c   : > { %243 = vst [vmem:[%s1238_s27 + $0x170] sm:$0xff] %v242_v46  ;;  %245 = vst [vmem:[%s1238_s27 + $0x178] sm:$0xff] %v244_v47  ;;  %v246_v48 = vld [vmem:[%s1233_s26 + $0x300] sm:$0xff]  ;;  %v248_v49 = vld [vmem:[%s1233_s26 + $0x308] sm:$0xff] }
  0x2d   : > { %v250_v50 = vld [vmem:[%s1233_s26 + $0x320] sm:$0xff]  ;;  %247 = vst [vmem:[%s1238_s27 + $0x180] sm:$0xff] %v246_v48  ;;  %249 = vst [vmem:[%s1238_s27 + $0x188] sm:$0xff] %v248_v49  ;;  %v252_v51 = vld [vmem:[%s1233_s26 + $0x328] sm:$0xff] }
  0x2e   : > { %251 = vst [vmem:[%s1238_s27 + $0x190] sm:$0xff] %v250_v50  ;;  %v254_v52 = vld [vmem:[%s1233_s26 + $0x340] sm:$0xff]  ;;  %v256_v53 = vld [vmem:[%s1233_s26 + $0x348] sm:$0xff]  ;;  %253 = vst [vmem:[%s1238_s27 + $0x198] sm:$0xff] %v252_v51 }
  0x2f   : > { %255 = vst [vmem:[%s1238_s27 + $0x1a0] sm:$0xff] %v254_v52  ;;  %257 = vst [vmem:[%s1238_s27 + $0x1a8] sm:$0xff] %v256_v53  ;;  %v258_v54 = vld [vmem:[%s1233_s26 + $0x360] sm:$0xff]  ;;  %v260_v55 = vld [vmem:[%s1233_s26 + $0x368] sm:$0xff] }
  0x30   : > { %v262_v56 = vld [vmem:[%s1233_s26 + $0x380] sm:$0xff]  ;;  %259 = vst [vmem:[%s1238_s27 + $0x1b0] sm:$0xff] %v258_v54  ;;  %261 = vst [vmem:[%s1238_s27 + $0x1b8] sm:$0xff] %v260_v55  ;;  %v264_v57 = vld [vmem:[%s1233_s26 + $0x388] sm:$0xff] }
  0x31   : > { %263 = vst [vmem:[%s1238_s27 + $0x1c0] sm:$0xff] %v262_v56  ;;  %v266_v58 = vld [vmem:[%s1233_s26 + $0x3a0] sm:$0xff]  ;;  %v268_v59 = vld [vmem:[%s1233_s26 + $0x3a8] sm:$0xff]  ;;  %265 = vst [vmem:[%s1238_s27 + $0x1c8] sm:$0xff] %v264_v57 }
  0x32   : > { %267 = vst [vmem:[%s1238_s27 + $0x1d0] sm:$0xff] %v266_v58  ;;  %269 = vst [vmem:[%s1238_s27 + $0x1d8] sm:$0xff] %v268_v59  ;;  %v270_v60 = vld [vmem:[%s1233_s26 + $0x3c0] sm:$0xff]  ;;  %v272_v61 = vld [vmem:[%s1233_s26 + $0x3c8] sm:$0xff] }
  0x33   : > { %v274_v62 = vld [vmem:[%s1233_s26 + $0x3e0] sm:$0xff]  ;;  %271 = vst [vmem:[%s1238_s27 + $0x1e0] sm:$0xff] %v270_v60  ;;  %273 = vst [vmem:[%s1238_s27 + $0x1e8] sm:$0xff] %v272_v61  ;;  %v276_v63 = vld [vmem:[%s1233_s26 + $0x3e8] sm:$0xff] }
  0x34   : > { %275 = vst [vmem:[%s1238_s27 + $0x1f0] sm:$0xff] %v274_v62  ;;  %277 = vst [vmem:[%s1238_s27 + $0x1f8] sm:$0xff] %v276_v63 }
  0x35 PF: > { %p939_p7 = scmp.ge.s32.totalorder %s1170_s14, 1  ;;  %p282_p8 = scmp.lt.s32.totalorder %s1170_s14, 3 }
  0x37   : > { %p283_p9 = pnand %p939_p7, %p282_p8 }
  0x38   : > { %s289_s28 = sand.u32 (!%p283_p9), 1, %s1162_s12   ;;  %v1147_v0 = vld [vmem:[%s1467_s0 + $0x4] ss:$8 sps:$4 sm:$0xff] (!%p283_p9)   ;;  %v1172_v1 = vmov (!%p283_p9), 0  }
  0x39   : > { %286 = sbr.rel (%p283_p9) target bundleno = 354 (0x162), region = 51  ;;  %s940_s29 = sshll.u32 (!%p283_p9), %s289_s28, 9  ;;  %1048 = vset.pattern.permute.xlu0 (!%p283_p9), %v1172_v1  ;;  %v379_v2 = vld [vmem:[%s1469_s2] sm:$0xff] (!%p283_p9)  ;;  %v380_v3 = vld [vmem:[%s1469_s2 + $0x8] sm:$0xff] (!%p283_p9)  ;;  %753 = vmatprep.mubr.bf16.mxu0 (!%p283_p9), %v1147_v0 }
  0x3a   : > { %383 = vperm.xlu0 (!%p283_p9), %1048, %v379_v2   ;;  %s1379_s9 = scalar_lea.vmem (!%p283_p9), [#allocation2], %s940_s29  ;;  %796 = vmatprep.mubr.bf16.mxu1 (!%p283_p9), %v1147_v0  ;;  %s941_s17 = sshll.u32 (!%p283_p9), %s289_s28, 5 }
  0x3b   : > { %v1049_v4 = vld [vmem:[%s1379_s9 + $0x4] ss:$16 sps:$4 sm:$0xff] (!%p283_p9)   ;;  %v1051_v5 = vld [vmem:[%s1379_s9 + $0xc] ss:$16 sps:$4 sm:$0xff] (!%p283_p9)   ;;  %v1053_v6 = vld [vmem:[%s1379_s9] ss:$16 sps:$4 sm:$0xff] (!%p283_p9)  }
  0x3c   : > { %721 = vmatprep.subr.bf16.mxu0 (!%p283_p9), %v1049_v4  ;;  %v1054_v7 = vld [vmem:[%s1379_s9 + $0x8] ss:$16 sps:$4 sm:$0xff] (!%p283_p9)   ;;  %764 = vmatprep.subr.bf16.mxu1 (!%p283_p9), %v1051_v5  ;;  %v1055_v8 = vld [vmem:[%s1379_s9 + $0x24] ss:$16 sps:$4 sm:$0xff] (!%p283_p9)   ;;  %v1057_v9 = vld [vmem:[%s1379_s9 + $0x2c] ss:$16 sps:$4 sm:$0xff] (!%p283_p9)  }
  0x3d   : > { %722 = vmatpush1.bf16.msra.mxu0 (!%p283_p9), %v1053_v6  ;;  %765 = vmatpush1.bf16.msra.mxu1 (!%p283_p9), %v1054_v7  ;;  %v1059_v10 = vld [vmem:[%s1379_s9 + $0x20] ss:$16 sps:$4 sm:$0xff] (!%p283_p9)   ;;  %v1060_v11 = vld [vmem:[%s1379_s9 + $0x28] ss:$16 sps:$4 sm:$0xff] (!%p283_p9)   ;;  %v1061_v12 = vld [vmem:[%s1379_s9 + $0x44] ss:$16 sps:$4 sm:$0xff] (!%p283_p9)  }
  0x3e   : > { %388 = vperm.xlu0 (!%p283_p9), %1048, %v380_v3   ;;  %723 = vmatprep.subr.bf16.mxu0 (!%p283_p9), %v1055_v8  ;;  %v1063_v13 = vld [vmem:[%s1379_s9 + $0x4c] ss:$16 sps:$4 sm:$0xff] (!%p283_p9)   ;;  %v1065_v14 = vld [vmem:[%s1379_s9 + $0x40] ss:$16 sps:$4 sm:$0xff] (!%p283_p9)   ;;  %v1066_v15 = vld [vmem:[%s1379_s9 + $0x48] ss:$16 sps:$4 sm:$0xff] (!%p283_p9)  }
  0x3f   : > { %766 = vmatprep.subr.bf16.mxu1 (!%p283_p9), %v1057_v9  ;;  %v1067_v16 = vld [vmem:[%s1379_s9 + $0x64] ss:$16 sps:$4 sm:$0xff] (!%p283_p9)   ;;  %v1069_v17 = vld [vmem:[%s1379_s9 + $0x6c] ss:$16 sps:$4 sm:$0xff] (!%p283_p9)   ;;  %v1071_v18 = vld [vmem:[%s1379_s9 + $0x60] ss:$16 sps:$4 sm:$0xff] (!%p283_p9)  }
  0x40   : > { %v1072_v19 = vld [vmem:[%s1379_s9 + $0x68] ss:$16 sps:$4 sm:$0xff]   ;;  %v1073_v20 = vld [vmem:[%s1379_s9 + $0x84] ss:$16 sps:$4 sm:$0xff]   ;;  %v1075_v21 = vld [vmem:[%s1379_s9 + $0x8c] ss:$16 sps:$4 sm:$0xff]  }
  0x41   : > { %724 = vmatpush1.bf16.msra.mxu0 %v1059_v10  ;;  %767 = vmatpush1.bf16.msra.mxu1 %v1060_v11  ;;  %v1077_v22 = vld [vmem:[%s1379_s9 + $0x80] ss:$16 sps:$4 sm:$0xff]   ;;  %v1078_v23 = vld [vmem:[%s1379_s9 + $0x88] ss:$16 sps:$4 sm:$0xff]   ;;  %v1079_v24 = vld [vmem:[%s1379_s9 + $0xa4] ss:$16 sps:$4 sm:$0xff]  }
  0x42   : > { %725 = vmatprep.subr.bf16.mxu0 %v1061_v12  ;;  %768 = vmatprep.subr.bf16.mxu1 %v1063_v13  ;;  %v1081_v25 = vld [vmem:[%s1379_s9 + $0xac] ss:$16 sps:$4 sm:$0xff]   ;;  %v1083_v26 = vld [vmem:[%s1379_s9 + $0xa0] ss:$16 sps:$4 sm:$0xff]   ;;  %v1084_v27 = vld [vmem:[%s1379_s9 + $0xa8] ss:$16 sps:$4 sm:$0xff]  }
  0x43   : > { %v1085_v28 = vld [vmem:[%s1379_s9 + $0xc4] ss:$16 sps:$4 sm:$0xff]   ;;  %v1087_v29 = vld [vmem:[%s1379_s9 + $0xcc] ss:$16 sps:$4 sm:$0xff]   ;;  %v1089_v30 = vld [vmem:[%s1379_s9 + $0xc0] ss:$16 sps:$4 sm:$0xff]  }
  0x44   : > { %v1090_v31 = vld [vmem:[%s1379_s9 + $0xc8] ss:$16 sps:$4 sm:$0xff]   ;;  %v1091_v32 = vld [vmem:[%s1379_s9 + $0xe4] ss:$16 sps:$4 sm:$0xff]   ;;  %v1093_v33 = vld [vmem:[%s1379_s9 + $0xec] ss:$16 sps:$4 sm:$0xff]  }
  0x45   : > { %726 = vmatpush1.bf16.msra.mxu0 %v1065_v14  ;;  %769 = vmatpush1.bf16.msra.mxu1 %v1066_v15  ;;  %v1095_v34 = vld [vmem:[%s1379_s9 + $0xe0] ss:$16 sps:$4 sm:$0xff]   ;;  %v1096_v35 = vld [vmem:[%s1379_s9 + $0xe8] ss:$16 sps:$4 sm:$0xff]   ;;  %v1097_v36 = vld [vmem:[%s1379_s9 + $0x104] ss:$16 sps:$4 sm:$0xff]  }
  0x46   : > { %727 = vmatprep.subr.bf16.mxu0 %v1067_v16  ;;  %770 = vmatprep.subr.bf16.mxu1 %v1069_v17  ;;  %v1099_v37 = vld [vmem:[%s1379_s9 + $0x10c] ss:$16 sps:$4 sm:$0xff]   ;;  %v1101_v38 = vld [vmem:[%s1379_s9 + $0x100] ss:$16 sps:$4 sm:$0xff]   ;;  %v1102_v39 = vld [vmem:[%s1379_s9 + $0x108] ss:$16 sps:$4 sm:$0xff]  }
  0x47   : > { %v1103_v40 = vld [vmem:[%s1379_s9 + $0x124] ss:$16 sps:$4 sm:$0xff]   ;;  %v1105_v41 = vld [vmem:[%s1379_s9 + $0x12c] ss:$16 sps:$4 sm:$0xff]   ;;  %v1107_v42 = vld [vmem:[%s1379_s9 + $0x120] ss:$16 sps:$4 sm:$0xff]  }
  0x48   : > { %v1108_v43 = vld [vmem:[%s1379_s9 + $0x128] ss:$16 sps:$4 sm:$0xff]   ;;  %v1109_v44 = vld [vmem:[%s1379_s9 + $0x144] ss:$16 sps:$4 sm:$0xff]   ;;  %v1111_v45 = vld [vmem:[%s1379_s9 + $0x14c] ss:$16 sps:$4 sm:$0xff]  }
  0x49   : > { %728 = vmatpush1.bf16.msra.mxu0 %v1071_v18  ;;  %771 = vmatpush1.bf16.msra.mxu1 %v1072_v19  ;;  %v1113_v46 = vld [vmem:[%s1379_s9 + $0x140] ss:$16 sps:$4 sm:$0xff]   ;;  %v1114_v47 = vld [vmem:[%s1379_s9 + $0x148] ss:$16 sps:$4 sm:$0xff]   ;;  %v1115_v48 = vld [vmem:[%s1379_s9 + $0x164] ss:$16 sps:$4 sm:$0xff]  }
  0x4a   : > { %729 = vmatprep.subr.bf16.mxu0 %v1073_v20  ;;  %772 = vmatprep.subr.bf16.mxu1 %v1075_v21  ;;  %v1117_v49 = vld [vmem:[%s1379_s9 + $0x16c] ss:$16 sps:$4 sm:$0xff]   ;;  %v1119_v50 = vld [vmem:[%s1379_s9 + $0x160] ss:$16 sps:$4 sm:$0xff]   ;;  %v1120_v51 = vld [vmem:[%s1379_s9 + $0x168] ss:$16 sps:$4 sm:$0xff]  }
  0x4b   : > { %v1121_v52 = vld [vmem:[%s1379_s9 + $0x184] ss:$16 sps:$4 sm:$0xff]   ;;  %v1123_v53 = vld [vmem:[%s1379_s9 + $0x18c] ss:$16 sps:$4 sm:$0xff]   ;;  %v1125_v54 = vld [vmem:[%s1379_s9 + $0x180] ss:$16 sps:$4 sm:$0xff]  }
  0x4c   : > { %v1126_v55 = vld [vmem:[%s1379_s9 + $0x188] ss:$16 sps:$4 sm:$0xff]   ;;  %v1127_v56 = vld [vmem:[%s1379_s9 + $0x1a4] ss:$16 sps:$4 sm:$0xff]   ;;  %v1129_v57 = vld [vmem:[%s1379_s9 + $0x1ac] ss:$16 sps:$4 sm:$0xff]  }
  0x4d   : > { %730 = vmatpush1.bf16.msra.mxu0 %v1077_v22  ;;  %773 = vmatpush1.bf16.msra.mxu1 %v1078_v23  ;;  %v1131_v58 = vld [vmem:[%s1379_s9 + $0x1a0] ss:$16 sps:$4 sm:$0xff]   ;;  %v1132_v59 = vld [vmem:[%s1379_s9 + $0x1a8] ss:$16 sps:$4 sm:$0xff]   ;;  %v1133_v60 = vld [vmem:[%s1379_s9 + $0x1c4] ss:$16 sps:$4 sm:$0xff]  }
  0x4e   : > { %731 = vmatprep.subr.bf16.mxu0 %v1079_v24  ;;  %774 = vmatprep.subr.bf16.mxu1 %v1081_v25  ;;  %v1135_v61 = vld [vmem:[%s1379_s9 + $0x1cc] ss:$16 sps:$4 sm:$0xff]   ;;  %v1137_v62 = vld [vmem:[%s1379_s9 + $0x1c0] ss:$16 sps:$4 sm:$0xff]   ;;  %v1138_v63 = vld [vmem:[%s1379_s9 + $0x1c8] ss:$16 sps:$4 sm:$0xff]  }
  0x4f   : > { %v1139_v0 = vld [vmem:[%s1379_s9 + $0x1e4] ss:$16 sps:$4 sm:$0xff]   ;;  %v1141_v1 = vld [vmem:[%s1379_s9 + $0x1ec] ss:$16 sps:$4 sm:$0xff]   ;;  %v1143_v2 = vld [vmem:[%s1379_s9 + $0x1e0] ss:$16 sps:$4 sm:$0xff]  }
  0x50   : > { %v1144_v3 = vld [vmem:[%s1379_s9 + $0x1e8] ss:$16 sps:$4 sm:$0xff]   ;;  %s310_s12 = scalar_lea.vmem [#allocation3], %s941_s17  ;;  %s1022_s18 = sshll.u32 (%p1223_p5), %s932_s15, 4 }
  0x51   : > { %732 = vmatpush1.bf16.msra.mxu0 %v1083_v26  ;;  %775 = vmatpush1.bf16.msra.mxu1 %v1084_v27  ;;  %v1145_v4 = vld [vmem:[%s1467_s0] ss:$8 sps:$4 sm:$0xff]   ;;  %s852_s23 = scalar_lea.vmem (%p1223_p5), %s1470_s3, %s1022_s18 }
  0x52   : > { %733 = vmatprep.subr.bf16.mxu0 %v1085_v28  ;;  %776 = vmatprep.subr.bf16.mxu1 %v1087_v29 }
  0x55   : > { %734 = vmatpush1.bf16.msra.mxu0 %v1089_v30  ;;  %777 = vmatpush1.bf16.msra.mxu1 %v1090_v31 }
  0x56   : > { %735 = vmatprep.subr.bf16.mxu0 %v1091_v32  ;;  %778 = vmatprep.subr.bf16.mxu1 %v1093_v33 }
  0x59   : > { %736 = vmatpush1.bf16.msra.mxu0 %v1095_v34  ;;  %779 = vmatpush1.bf16.msra.mxu1 %v1096_v35 }
  0x5a   : > { %737 = vmatprep.subr.bf16.mxu0 %v1097_v36  ;;  %780 = vmatprep.subr.bf16.mxu1 %v1099_v37 }
  0x5d   : > { %738 = vmatpush1.bf16.msra.mxu0 %v1101_v38  ;;  %781 = vmatpush1.bf16.msra.mxu1 %v1102_v39 }
  0x5e   : > { %739 = vmatprep.subr.bf16.mxu0 %v1103_v40  ;;  %782 = vmatprep.subr.bf16.mxu1 %v1105_v41 }
  0x61   : > { %740 = vmatpush1.bf16.msra.mxu0 %v1107_v42  ;;  %783 = vmatpush1.bf16.msra.mxu1 %v1108_v43 }
  0x62   : > { %741 = vmatprep.subr.bf16.mxu0 %v1109_v44  ;;  %784 = vmatprep.subr.bf16.mxu1 %v1111_v45 }
  0x65   : > { %742 = vmatpush1.bf16.msra.mxu0 %v1113_v46  ;;  %785 = vmatpush1.bf16.msra.mxu1 %v1114_v47 }
  0x66   : > { %743 = vmatprep.subr.bf16.mxu0 %v1115_v48  ;;  %786 = vmatprep.subr.bf16.mxu1 %v1117_v49 }
  0x69   : > { %744 = vmatpush1.bf16.msra.mxu0 %v1119_v50  ;;  %787 = vmatpush1.bf16.msra.mxu1 %v1120_v51 }
  0x6a   : > { %745 = vmatprep.subr.bf16.mxu0 %v1121_v52  ;;  %788 = vmatprep.subr.bf16.mxu1 %v1123_v53 }
  0x6d   : > { %746 = vmatpush1.bf16.msra.mxu0 %v1125_v54  ;;  %789 = vmatpush1.bf16.msra.mxu1 %v1126_v55 }
  0x6e   : > { %747 = vmatprep.subr.bf16.mxu0 %v1127_v56  ;;  %790 = vmatprep.subr.bf16.mxu1 %v1129_v57 }
  0x71   : > { %748 = vmatpush1.bf16.msra.mxu0 %v1131_v58  ;;  %791 = vmatpush1.bf16.msra.mxu1 %v1132_v59 }
  0x72   : > { %749 = vmatprep.subr.bf16.mxu0 %v1133_v60  ;;  %792 = vmatprep.subr.bf16.mxu1 %v1135_v61 }
  0x75   : > { %750 = vmatpush1.bf16.msra.mxu0 %v1137_v62  ;;  %793 = vmatpush1.bf16.msra.mxu1 %v1138_v63 }
  0x76   : > { %751 = vmatprep.subr.bf16.mxu0 %v1139_v0  ;;  %794 = vmatprep.subr.bf16.mxu1 %v1141_v1 }
  0x79   : > { %752 = vmatpush1.bf16.msra.mxu0 %v1143_v2  ;;  %795 = vmatpush1.bf16.msra.mxu1 %v1144_v3 }
  0x7c   : > { %754 = vmatmul.mubr.bf16.vlgmr.msra.gmra.mrb[0].mxu0 %v1145_v4  ;;  %797 = vmatmul.mubr.bf16.vlgmr.msra.gmra.mrb[0].mxu1 %v1145_v4 }
  0xb9   : > { %v384_v5 = vpop.permute.xlu0 %383 }
  0xbd   : > { %v389_v6 = vpop.permute.xlu0 %388 }
 0x14f   : > { %v755_v7 = vpop.f32.mrb[0].mxu0  ;;  %v798_v8 = vpop.f32.mrb[0].mxu1 }
 0x150   : > { %v756_v9 = vadd.f32 %v755_v7, %v384_v5  ;;  %v799_v10 = vadd.f32 %v798_v8, %v384_v5  ;;  %v757_v11 = vpop.f32.mrb[1].mxu0  ;;  %v800_v12 = vpop.f32.mrb[1].mxu1 }
 0x151   : > { %v758_v13 = vadd.f32 %v757_v11, %v384_v5  ;;  %v801_v14 = vadd.f32 %v800_v12, %v384_v5  ;;  %v759_v15 = vpop.f32.mrb[2].mxu0  ;;  %v802_v16 = vpop.f32.mrb[2].mxu1 }
 0x152   : > { %v807_v17 = vmax.f32 %v756_v9, 0.0  ;;  %v809_v18 = vmax.f32 %v799_v10, 0.0  ;;  %v760_v19 = vadd.f32 %v759_v15, %v389_v6  ;;  %v803_v20 = vadd.f32 %v802_v16, %v389_v6  ;;  %v761_v21 = vpop.f32.mrb[3].mxu0  ;;  %v804_v22 = vpop.f32.mrb[3].mxu1 }
 0x153   : > { %v808_v23 = vmax.f32 %v758_v13, 0.0  ;;  %v810_v24 = vmax.f32 %v801_v14, 0.0  ;;  %v762_v25 = vadd.f32 %v761_v21, %v389_v6  ;;  %v805_v26 = vadd.f32 %v804_v22, %v389_v6  ;;  %849 = sbr.rel (!%p1223_p5) target bundleno = 354 (0x162), region = 59 }
 0x154   : > { %v811_v27 = vmax.f32 %v760_v19, 0.0  ;;  %v813_v28 = vmax.f32 %v803_v20, 0.0 }
 0x155   : > { %v1018_v29 = vpack.c.bf16 %v808_v23, %v807_v17  ;;  %v1019_v30 = vpack.c.bf16 %v810_v24, %v809_v18  ;;  %v812_v31 = vmax.f32 %v762_v25, 0.0  ;;  %v814_v32 = vmax.f32 %v805_v26, 0.0 }
 0x157   : > { %839 = vst [vmem:[%s310_s12] sm:$0xff] %v1018_v29  ;;  %840 = vst [vmem:[%s310_s12 + $0x8] sm:$0xff] %v1019_v30  ;;  %v1020_v33 = vpack.c.bf16 %v812_v31, %v811_v27  ;;  %v1021_v34 = vpack.c.bf16 %v814_v32, %v813_v28 }
 0x159   : > { %841 = vst [vmem:[%s310_s12 + $0x10] sm:$0xff] %v1020_v33  ;;  %842 = vst [vmem:[%s310_s12 + $0x18] sm:$0xff] %v1021_v34 }
 0x15e   : > { %v865_v35 = vld [vmem:[%s310_s12] sm:$0xff]  ;;  %v867_v36 = vld [vmem:[%s310_s12 + $0x8] sm:$0xff] }
 0x15f   : > { %866 = vst [vmem:[%s852_s23] sm:$0xff] %v865_v35  ;;  %868 = vst [vmem:[%s852_s23 + $0x8] sm:$0xff] %v867_v36 }
 0x160   : > { %v869_v37 = vld [vmem:[%s310_s12 + $0x10] sm:$0xff]  ;;  %v871_v38 = vld [vmem:[%s310_s12 + $0x18] sm:$0xff] }
 0x161   : > { %870 = vst [vmem:[%s852_s23 + $0x20] sm:$0xff] %v869_v37  ;;  %872 = vst [vmem:[%s852_s23 + $0x28] sm:$0xff] %v871_v38 }
 0x162 PF: > { %p10_p10 = scmp.ge.s32.totalorder %s1210_s16, 4   ;;  %s1472_s12 = smov %s1166_s13 }
 0x163   : > { %s1473_s13 = smov %s1221_s19  ;;  %s1474_s14 = smov %s1210_s16 }
 0x164   :  { %12 = sbr.rel (!%p10_p10) target bundleno = 2 (0x2), region = 113 }

// kernel: dqn_forward.4
= control target key start
LH: loop header
LB: loop body
LE: loop exit
PB: predicated region body
PF: predicated region fallthrough
CT: control target
= control target key end

     0   :  { %v480_v1 = vmov 0   ;;  %s633_s1 = inlined_call_operand.vmem [shape: bf16[256,256], index: 1, kind: input, shape index: {}]   ;;  %s634_s0 = inlined_call_operand.vmem [shape: bf16[32,256], index: 0, kind: input, shape index: {}]   ;;  %s635_s2 = inlined_call_operand.vmem [shape: f32[32,1], index: 2, kind: input, shape index: {}]   ;;  %s636_s3 = inlined_call_operand.vmem [shape: bf16[32,256], index: 3, kind: output, shape index: {}]  }
   0x1   :  { %v426_v0 = vld [vmem:[%s633_s1 + $0x4] ss:$8 sps:$4 sm:$0xff]   ;;  %425 = vset.pattern.permute.xlu1 %v480_v1  ;;  %424 = vset.pattern.permute.xlu0 %v480_v1  ;;  %v428_v2 = vld [vmem:[%s633_s1] ss:$8 sps:$4 sm:$0xff]   ;;  %v429_v3 = vld [vmem:[%s633_s1 + $0x14] ss:$8 sps:$4 sm:$0xff]  }
   0x2   :  { %254 = vmatprep.subr.bf16.mxu0 %v426_v0  ;;  %391 = vmatprep.subr.bf16.mxu1 %v426_v0  ;;  %v431_v4 = vld [vmem:[%s633_s1 + $0x10] ss:$8 sps:$4 sm:$0xff]   ;;  %v432_v5 = vld [vmem:[%s633_s1 + $0x24] ss:$8 sps:$4 sm:$0xff]   ;;  %v434_v6 = vld [vmem:[%s633_s1 + $0x20] ss:$8 sps:$4 sm:$0xff]  }
   0x3   :  { %255 = vmatpush1.bf16.msra.mxu0 %v428_v2  ;;  %407 = vmatpush1.bf16.msra.mxu1 %v428_v2  ;;  %v435_v7 = vld [vmem:[%s633_s1 + $0x34] ss:$8 sps:$4 sm:$0xff]   ;;  %v437_v8 = vld [vmem:[%s633_s1 + $0x30] ss:$8 sps:$4 sm:$0xff]   ;;  %v438_v9 = vld [vmem:[%s633_s1 + $0x44] ss:$8 sps:$4 sm:$0xff]  }
   0x4   :  { %256 = vmatprep.subr.bf16.mxu0 %v429_v3  ;;  %392 = vmatprep.subr.bf16.mxu1 %v429_v3  ;;  %v440_v10 = vld [vmem:[%s633_s1 + $0x40] ss:$8 sps:$4 sm:$0xff]   ;;  %v441_v11 = vld [vmem:[%s633_s1 + $0x54] ss:$8 sps:$4 sm:$0xff]   ;;  %v443_v12 = vld [vmem:[%s633_s1 + $0x50] ss:$8 sps:$4 sm:$0xff]  }
   0x5   :  { %v444_v13 = vld [vmem:[%s633_s1 + $0x64] ss:$8 sps:$4 sm:$0xff]   ;;  %v446_v15 = vld [vmem:[%s633_s1 + $0x60] ss:$8 sps:$4 sm:$0xff]   ;;  %v479_v16 = vld [vmem:[%s634_s0 + $0x14] ss:$8 sps:$4 sm:$0xff]  }
   0x6   :  { %v476_v14 = vld [vmem:[%s634_s0 + $0x4] ss:$8 sps:$4 sm:$0xff]   ;;  %v447_v17 = vld [vmem:[%s633_s1 + $0x74] ss:$8 sps:$4 sm:$0xff]   ;;  %296 = vmatprep.mubr.bf16.mxu1 %v479_v16  ;;  %v449_v20 = vld [vmem:[%s633_s1 + $0x70] ss:$8 sps:$4 sm:$0xff]  }
   0x7   :  { %257 = vmatpush1.bf16.msra.mxu0 %v431_v4  ;;  %408 = vmatpush1.bf16.msra.mxu1 %v431_v4  ;;  %v52_v18 = vld [vmem:[%s635_s2 + $0x10] sm:$0xff]  ;;  %v50_v19 = vld [vmem:[%s635_s2] sm:$0xff]  ;;  %v53_v21 = vld [vmem:[%s635_s2 + $0x18] sm:$0xff] }
   0x8   :  { %258 = vmatprep.subr.bf16.mxu0 %v432_v5  ;;  %393 = vmatprep.subr.bf16.mxu1 %v432_v5  ;;  %v51_v22 = vld [vmem:[%s635_s2 + $0x8] sm:$0xff]  ;;  %v453_v25 = vld [vmem:[%s633_s1 + $0x94] ss:$8 sps:$4 sm:$0xff]   ;;  %v455_v26 = vld [vmem:[%s633_s1 + $0x90] ss:$8 sps:$4 sm:$0xff]  }
   0x9   :  { %286 = vmatprep.mubr.bf16.mxu0 %v476_v14  ;;  %66 = vperm.xlu1 %425, %v52_v18   ;;  %v450_v23 = vld [vmem:[%s633_s1 + $0x84] ss:$8 sps:$4 sm:$0xff]   ;;  %v452_v24 = vld [vmem:[%s633_s1 + $0x80] ss:$8 sps:$4 sm:$0xff]   ;;  %v459_v29 = vld [vmem:[%s633_s1 + $0xb4] ss:$8 sps:$4 sm:$0xff]  }
   0xa   :  { %56 = vperm.xlu0 %424, %v50_v19   ;;  %v456_v27 = vld [vmem:[%s633_s1 + $0xa4] ss:$8 sps:$4 sm:$0xff]   ;;  %v458_v28 = vld [vmem:[%s633_s1 + $0xa0] ss:$8 sps:$4 sm:$0xff]   ;;  %v461_v30 = vld [vmem:[%s633_s1 + $0xb0] ss:$8 sps:$4 sm:$0xff]  }
   0xb   :  { %259 = vmatpush1.bf16.msra.mxu0 %v434_v6  ;;  %409 = vmatpush1.bf16.msra.mxu1 %v434_v6  ;;  %v462_v31 = vld [vmem:[%s633_s1 + $0xc4] ss:$8 sps:$4 sm:$0xff]   ;;  %v464_v32 = vld [vmem:[%s633_s1 + $0xc0] ss:$8 sps:$4 sm:$0xff]   ;;  %v465_v33 = vld [vmem:[%s633_s1 + $0xd4] ss:$8 sps:$4 sm:$0xff]  }
   0xc   :  { %260 = vmatprep.subr.bf16.mxu0 %v435_v7  ;;  %394 = vmatprep.subr.bf16.mxu1 %v435_v7  ;;  %v467_v34 = vld [vmem:[%s633_s1 + $0xd0] ss:$8 sps:$4 sm:$0xff]   ;;  %v468_v35 = vld [vmem:[%s633_s1 + $0xe4] ss:$8 sps:$4 sm:$0xff]   ;;  %v470_v36 = vld [vmem:[%s633_s1 + $0xe0] ss:$8 sps:$4 sm:$0xff]  }
   0xd   :  { %71 = vperm.xlu1 %425, %v53_v21   ;;  %v471_v37 = vld [vmem:[%s633_s1 + $0xf4] ss:$8 sps:$4 sm:$0xff]   ;;  %v473_v38 = vld [vmem:[%s633_s1 + $0xf0] ss:$8 sps:$4 sm:$0xff]   ;;  %v474_v39 = vld [vmem:[%s634_s0] ss:$8 sps:$4 sm:$0xff]  }
   0xe   :  { %61 = vperm.xlu0 %424, %v51_v22   ;;  %v477_v40 = vld [vmem:[%s634_s0 + $0x10] ss:$8 sps:$4 sm:$0xff]  }
   0xf   :  { %261 = vmatpush1.bf16.msra.mxu0 %v437_v8  ;;  %410 = vmatpush1.bf16.msra.mxu1 %v437_v8 }
  0x10   :  { %262 = vmatprep.subr.bf16.mxu0 %v438_v9  ;;  %395 = vmatprep.subr.bf16.mxu1 %v438_v9 }
  0x13   :  { %263 = vmatpush1.bf16.msra.mxu0 %v440_v10  ;;  %411 = vmatpush1.bf16.msra.mxu1 %v440_v10 }
  0x14   :  { %264 = vmatprep.subr.bf16.mxu0 %v441_v11  ;;  %396 = vmatprep.subr.bf16.mxu1 %v441_v11 }
  0x17   :  { %265 = vmatpush1.bf16.msra.mxu0 %v443_v12  ;;  %412 = vmatpush1.bf16.msra.mxu1 %v443_v12 }
  0x18   :  { %266 = vmatprep.subr.bf16.mxu0 %v444_v13  ;;  %397 = vmatprep.subr.bf16.mxu1 %v444_v13 }
  0x1b   :  { %267 = vmatpush1.bf16.msra.mxu0 %v446_v15  ;;  %413 = vmatpush1.bf16.msra.mxu1 %v446_v15 }
  0x1c   :  { %268 = vmatprep.subr.bf16.mxu0 %v447_v17  ;;  %398 = vmatprep.subr.bf16.mxu1 %v447_v17 }
  0x1f   :  { %269 = vmatpush1.bf16.msra.mxu0 %v449_v20  ;;  %414 = vmatpush1.bf16.msra.mxu1 %v449_v20 }
  0x20   :  { %270 = vmatprep.subr.bf16.mxu0 %v450_v23  ;;  %399 = vmatprep.subr.bf16.mxu1 %v450_v23 }
  0x23   :  { %271 = vmatpush1.bf16.msra.mxu0 %v452_v24  ;;  %415 = vmatpush1.bf16.msra.mxu1 %v452_v24 }
  0x24   :  { %272 = vmatprep.subr.bf16.mxu0 %v453_v25  ;;  %400 = vmatprep.subr.bf16.mxu1 %v453_v25 }
  0x27   :  { %273 = vmatpush1.bf16.msra.mxu0 %v455_v26  ;;  %416 = vmatpush1.bf16.msra.mxu1 %v455_v26 }
  0x28   :  { %274 = vmatprep.subr.bf16.mxu0 %v456_v27  ;;  %401 = vmatprep.subr.bf16.mxu1 %v456_v27 }
  0x2b   :  { %275 = vmatpush1.bf16.msra.mxu0 %v458_v28  ;;  %417 = vmatpush1.bf16.msra.mxu1 %v458_v28 }
  0x2c   :  { %276 = vmatprep.subr.bf16.mxu0 %v459_v29  ;;  %402 = vmatprep.subr.bf16.mxu1 %v459_v29 }
  0x2f   :  { %277 = vmatpush1.bf16.msra.mxu0 %v461_v30  ;;  %418 = vmatpush1.bf16.msra.mxu1 %v461_v30 }
  0x30   :  { %278 = vmatprep.subr.bf16.mxu0 %v462_v31  ;;  %403 = vmatprep.subr.bf16.mxu1 %v462_v31 }
  0x33   :  { %279 = vmatpush1.bf16.msra.mxu0 %v464_v32  ;;  %419 = vmatpush1.bf16.msra.mxu1 %v464_v32 }
  0x34   :  { %280 = vmatprep.subr.bf16.mxu0 %v465_v33  ;;  %404 = vmatprep.subr.bf16.mxu1 %v465_v33 }
  0x37   :  { %281 = vmatpush1.bf16.msra.mxu0 %v467_v34  ;;  %420 = vmatpush1.bf16.msra.mxu1 %v467_v34 }
  0x38   :  { %282 = vmatprep.subr.bf16.mxu0 %v468_v35  ;;  %405 = vmatprep.subr.bf16.mxu1 %v468_v35 }
  0x3b   :  { %283 = vmatpush1.bf16.msra.mxu0 %v470_v36  ;;  %421 = vmatpush1.bf16.msra.mxu1 %v470_v36 }
  0x3c   :  { %284 = vmatprep.subr.bf16.mxu0 %v471_v37  ;;  %406 = vmatprep.subr.bf16.mxu1 %v471_v37 }
  0x3f   :  { %285 = vmatpush1.bf16.msra.mxu0 %v473_v38  ;;  %422 = vmatpush1.bf16.msra.mxu1 %v473_v38 }
  0x42   :  { %287 = vmatmul.mubr.bf16.vlgmr.msra.gmra.mrb[0].mxu0 %v474_v39  ;;  %297 = vmatmul.mubr.bf16.vlgmr.msra.gmra.mrb[0].mxu1 %v477_v40 }
  0x88   :  { %v67_v41 = vpop.permute.xlu1 %66 }
  0x89   :  { %v57_v42 = vpop.permute.xlu0 %56 }
  0x8c   :  { %v72_v43 = vpop.permute.xlu1 %71 }
  0x8d   :  { %v62_v44 = vpop.permute.xlu0 %61 }
 0x115   :  { %v288_v45 = vpop.f32.mrb[0].mxu0  ;;  %v298_v46 = vpop.f32.mrb[0].mxu1 }
 0x116   :  { %v289_v47 = vadd.f32 %v288_v45, %v57_v42  ;;  %v299_v48 = vadd.f32 %v298_v46, %v67_v41  ;;  %v290_v49 = vpop.f32.mrb[1].mxu0  ;;  %v300_v50 = vpop.f32.mrb[1].mxu1 }
 0x117   :  { %v291_v51 = vadd.f32 %v290_v49, %v57_v42  ;;  %v301_v52 = vadd.f32 %v300_v50, %v67_v41  ;;  %v292_v53 = vpop.f32.mrb[2].mxu0  ;;  %v302_v54 = vpop.f32.mrb[2].mxu1 }
 0x118   :  { %v307_v55 = vmax.f32 %v289_v47, 0.0  ;;  %v311_v56 = vmax.f32 %v299_v48, 0.0  ;;  %v293_v57 = vadd.f32 %v292_v53, %v62_v44  ;;  %v303_v58 = vadd.f32 %v302_v54, %v72_v43  ;;  %v294_v59 = vpop.f32.mrb[3].mxu0  ;;  %v304_v60 = vpop.f32.mrb[3].mxu1 }
 0x119   :  { %v308_v61 = vmax.f32 %v291_v51, 0.0  ;;  %v312_v62 = vmax.f32 %v301_v52, 0.0  ;;  %v295_v63 = vadd.f32 %v294_v59, %v62_v44  ;;  %v305_v0 = vadd.f32 %v304_v60, %v72_v43 }
 0x11a   :  { %v309_v1 = vmax.f32 %v293_v57, 0.0  ;;  %v313_v2 = vmax.f32 %v303_v58, 0.0 }
 0x11b   :  { %v387_v3 = vpack.c.bf16 %v308_v61, %v307_v55  ;;  %v389_v4 = vpack.c.bf16 %v312_v62, %v311_v56  ;;  %v310_v5 = vmax.f32 %v295_v63, 0.0  ;;  %v314_v6 = vmax.f32 %v305_v0, 0.0 }
 0x11d   :  { %339 = vst [vmem:[%s636_s3] sm:$0xff] %v387_v3  ;;  %341 = vst [vmem:[%s636_s3 + $0x10] sm:$0xff] %v389_v4  ;;  %v388_v7 = vpack.c.bf16 %v310_v5, %v309_v1  ;;  %v390_v8 = vpack.c.bf16 %v314_v6, %v313_v2 }
 0x11f   :  { %340 = vst [vmem:[%s636_s3 + $0x8] sm:$0xff] %v388_v7  ;;  %342 = vst [vmem:[%s636_s3 + $0x18] sm:$0xff] %v390_v8 }

// kernel: dqn_forward.5
= control target key start
LH: loop header
LB: loop body
LE: loop exit
PB: predicated region body
PF: predicated region fallthrough
CT: control target
= control target key end

     0   :  { %s4924_s1 = inlined_call_operand.vmem [shape: bf16[2688,256], index: 1, kind: input, shape index: {}]   ;;  %s4925_s0 = inlined_call_operand.vmem [shape: bf16[8,2688], index: 0, kind: input, shape index: {}]   ;;  %s4926_s3 = inlined_call_operand.vmem [shape: bf16[256,128], index: 3, kind: input, shape index: {}]   ;;  %s4927_s2 = inlined_call_operand.vmem [shape: f32[1,256], index: 2, kind: input, shape index: {}]   ;;  %s4928_s4 = inlined_call_operand.vmem [shape: f32[1,128], index: 4, kind: input, shape index: {}]   ;;  %s4929_s5 = inlined_call_operand.vmem [shape: f32[8,128], index: 5, kind: output, shape index: {}]  }
   0x1   :  { %v3206_v0 = vld [vmem:[%s4924_s1 + $0x4] ss:$8 sps:$4 sm:$0xff]   ;;  %v3210_v2 = vld [vmem:[%s4924_s1] ss:$8 sps:$4 sm:$0xff]   ;;  %v3212_v4 = vld [vmem:[%s4924_s1 + $0x14] ss:$8 sps:$4 sm:$0xff]  }
   0x2   :  { %v3208_v1 = vld [vmem:[%s4924_s1 + $0x504] ss:$8 sps:$4 sm:$0xff]   ;;  %2134 = vmatprep.subr.bf16.mxu1 %v3206_v0  ;;  %v3211_v3 = vld [vmem:[%s4924_s1 + $0x500] ss:$8 sps:$4 sm:$0xff]   ;;  %v3214_v5 = vld [vmem:[%s4924_s1 + $0x514] ss:$8 sps:$4 sm:$0xff]  }
   0x3   :  { %2339 = vmatprep.subr.bf16.mxu0 %v3208_v1  ;;  %2135 = vmatpush1.bf16.msra.mxu1 %v3210_v2  ;;  %v3216_v6 = vld [vmem:[%s4924_s1 + $0x10] ss:$8 sps:$4 sm:$0xff]   ;;  %v3218_v8 = vld [vmem:[%s4924_s1 + $0x24] ss:$8 sps:$4 sm:$0xff]   ;;  %v3222_v10 = vld [vmem:[%s4924_s1 + $0x20] ss:$8 sps:$4 sm:$0xff]  }
   0x4   :  { %2340 = vmatpush1.bf16.msra.mxu0 %v3211_v3  ;;  %2136 = vmatprep.subr.bf16.mxu1 %v3212_v4  ;;  %v3217_v7 = vld [vmem:[%s4924_s1 + $0x510] ss:$8 sps:$4 sm:$0xff]   ;;  %v3220_v9 = vld [vmem:[%s4924_s1 + $0x524] ss:$8 sps:$4 sm:$0xff]   ;;  %v3223_v11 = vld [vmem:[%s4924_s1 + $0x520] ss:$8 sps:$4 sm:$0xff]  }
   0x5   :  { %2341 = vmatprep.subr.bf16.mxu0 %v3214_v5  ;;  %v3224_v12 = vld [vmem:[%s4924_s1 + $0x34] ss:$8 sps:$4 sm:$0xff]   ;;  %v3228_v14 = vld [vmem:[%s4924_s1 + $0x30] ss:$8 sps:$4 sm:$0xff]   ;;  %v3230_v16 = vld [vmem:[%s4924_s1 + $0x44] ss:$8 sps:$4 sm:$0xff]  }
   0x6   :  { %v3226_v13 = vld [vmem:[%s4924_s1 + $0x534] ss:$8 sps:$4 sm:$0xff]   ;;  %v3229_v15 = vld [vmem:[%s4924_s1 + $0x530] ss:$8 sps:$4 sm:$0xff]   ;;  %v3232_v17 = vld [vmem:[%s4924_s1 + $0x544] ss:$8 sps:$4 sm:$0xff]  }
   0x7   :  { %2137 = vmatpush1.bf16.msra.mxu1 %v3216_v6  ;;  %v3234_v18 = vld [vmem:[%s4924_s1 + $0x40] ss:$8 sps:$4 sm:$0xff]   ;;  %v3236_v20 = vld [vmem:[%s4924_s1 + $0x54] ss:$8 sps:$4 sm:$0xff]   ;;  %v3240_v22 = vld [vmem:[%s4924_s1 + $0x50] ss:$8 sps:$4 sm:$0xff]  }
   0x8   :  { %2342 = vmatpush1.bf16.msra.mxu0 %v3217_v7  ;;  %2138 = vmatprep.subr.bf16.mxu1 %v3218_v8  ;;  %v3235_v19 = vld [vmem:[%s4924_s1 + $0x540] ss:$8 sps:$4 sm:$0xff]   ;;  %v3238_v21 = vld [vmem:[%s4924_s1 + $0x554] ss:$8 sps:$4 sm:$0xff]   ;;  %v3241_v23 = vld [vmem:[%s4924_s1 + $0x550] ss:$8 sps:$4 sm:$0xff]  }
   0x9   :  { %2343 = vmatprep.subr.bf16.mxu0 %v3220_v9  ;;  %v3242_v24 = vld [vmem:[%s4924_s1 + $0x64] ss:$8 sps:$4 sm:$0xff]   ;;  %v3246_v26 = vld [vmem:[%s4924_s1 + $0x60] ss:$8 sps:$4 sm:$0xff]   ;;  %v3248_v28 = vld [vmem:[%s4924_s1 + $0x74] ss:$8 sps:$4 sm:$0xff]  }
   0xa   :  { %v3244_v25 = vld [vmem:[%s4924_s1 + $0x564] ss:$8 sps:$4 sm:$0xff]   ;;  %v3247_v27 = vld [vmem:[%s4924_s1 + $0x560] ss:$8 sps:$4 sm:$0xff]   ;;  %v3250_v29 = vld [vmem:[%s4924_s1 + $0x574] ss:$8 sps:$4 sm:$0xff]  }
   0xb   :  { %2139 = vmatpush1.bf16.msra.mxu1 %v3222_v10  ;;  %v3252_v30 = vld [vmem:[%s4924_s1 + $0x70] ss:$8 sps:$4 sm:$0xff]   ;;  %v3254_v32 = vld [vmem:[%s4924_s1 + $0x84] ss:$8 sps:$4 sm:$0xff]   ;;  %v3258_v34 = vld [vmem:[%s4924_s1 + $0x80] ss:$8 sps:$4 sm:$0xff]  }
   0xc   :  { %2344 = vmatpush1.bf16.msra.mxu0 %v3223_v11  ;;  %2140 = vmatprep.subr.bf16.mxu1 %v3224_v12  ;;  %v3253_v31 = vld [vmem:[%s4924_s1 + $0x570] ss:$8 sps:$4 sm:$0xff]   ;;  %v3256_v33 = vld [vmem:[%s4924_s1 + $0x584] ss:$8 sps:$4 sm:$0xff]   ;;  %v3259_v35 = vld [vmem:[%s4924_s1 + $0x580] ss:$8 sps:$4 sm:$0xff]  }
   0xd   :  { %2345 = vmatprep.subr.bf16.mxu0 %v3226_v13  ;;  %v3260_v36 = vld [vmem:[%s4924_s1 + $0x94] ss:$8 sps:$4 sm:$0xff]   ;;  %v3264_v38 = vld [vmem:[%s4924_s1 + $0x90] ss:$8 sps:$4 sm:$0xff]   ;;  %v3266_v40 = vld [vmem:[%s4924_s1 + $0xa4] ss:$8 sps:$4 sm:$0xff]  }
   0xe   :  { %v3262_v37 = vld [vmem:[%s4924_s1 + $0x594] ss:$8 sps:$4 sm:$0xff]   ;;  %v3265_v39 = vld [vmem:[%s4924_s1 + $0x590] ss:$8 sps:$4 sm:$0xff]   ;;  %v3268_v41 = vld [vmem:[%s4924_s1 + $0x5a4] ss:$8 sps:$4 sm:$0xff]  }
   0xf   :  { %2141 = vmatpush1.bf16.msra.mxu1 %v3228_v14  ;;  %v3270_v42 = vld [vmem:[%s4924_s1 + $0xa0] ss:$8 sps:$4 sm:$0xff]   ;;  %v3272_v44 = vld [vmem:[%s4924_s1 + $0xb4] ss:$8 sps:$4 sm:$0xff]   ;;  %v3276_v47 = vld [vmem:[%s4924_s1 + $0xb0] ss:$8 sps:$4 sm:$0xff]  }
  0x10   :  { %2346 = vmatpush1.bf16.msra.mxu0 %v3229_v15  ;;  %2142 = vmatprep.subr.bf16.mxu1 %v3230_v16  ;;  %v3271_v43 = vld [vmem:[%s4924_s1 + $0x5a0] ss:$8 sps:$4 sm:$0xff]   ;;  %v3274_v45 = vld [vmem:[%s4924_s1 + $0x5b4] ss:$8 sps:$4 sm:$0xff]   ;;  %v3277_v49 = vld [vmem:[%s4924_s1 + $0x5b0] ss:$8 sps:$4 sm:$0xff]  }
  0x11   :  { %2347 = vmatprep.subr.bf16.mxu0 %v3232_v17  ;;  %v21_v46 = vld [vmem:[%s4925_s0] sm:$0xff]  ;;  %v26_v50 = vld [vmem:[%s4925_s0 + $0x28] sm:$0xff]  ;;  %v3284_v56 = vld [vmem:[%s4924_s1 + $0xd4] ss:$8 sps:$4 sm:$0xff]  }
  0x12   :  { %v2770_v48 = vcombine.high %v21_v46, %v21_v46  ;;  %v3278_v51 = vld [vmem:[%s4924_s1 + $0xc4] ss:$8 sps:$4 sm:$0xff]   ;;  %v2780_v53 = vcombine.high %v26_v50, %v26_v50  ;;  %v3282_v54 = vld [vmem:[%s4924_s1 + $0xc0] ss:$8 sps:$4 sm:$0xff]   ;;  %v3286_v57 = vld [vmem:[%s4924_s1 + $0x5d4] ss:$8 sps:$4 sm:$0xff]   ;;  %v2769_v6 = vcombine.low %v21_v46, %v21_v46  ;;  %v2779_v7 = vcombine.low %v26_v50, %v26_v50 }
  0x13   :  { %2143 = vmatpush1.bf16.msra.mxu1 %v3234_v18  ;;  %v3280_v52 = vld [vmem:[%s4924_s1 + $0x5c4] ss:$8 sps:$4 sm:$0xff]   ;;  %v3283_v55 = vld [vmem:[%s4924_s1 + $0x5c0] ss:$8 sps:$4 sm:$0xff]   ;;  %v3288_v58 = vld [vmem:[%s4924_s1 + $0xd0] ss:$8 sps:$4 sm:$0xff]  }
  0x14   :  { %2348 = vmatpush1.bf16.msra.mxu0 %v3235_v19  ;;  %2144 = vmatprep.subr.bf16.mxu1 %v3236_v20  ;;  %v3289_v59 = vld [vmem:[%s4924_s1 + $0x5d0] ss:$8 sps:$4 sm:$0xff]   ;;  %v3290_v60 = vld [vmem:[%s4924_s1 + $0xe4] ss:$8 sps:$4 sm:$0xff]   ;;  %v3294_v62 = vld [vmem:[%s4924_s1 + $0xe0] ss:$8 sps:$4 sm:$0xff]  }
  0x15   :  { %2349 = vmatprep.subr.bf16.mxu0 %v3238_v21  ;;  %2166 = vmatprep.mubr.bf16.mxu1 %v2770_v48  ;;  %v3292_v61 = vld [vmem:[%s4924_s1 + $0x5e4] ss:$8 sps:$4 sm:$0xff]   ;;  %v3295_v63 = vld [vmem:[%s4924_s1 + $0x5e0] ss:$8 sps:$4 sm:$0xff]   ;;  %v3296_v0 = vld [vmem:[%s4924_s1 + $0xf4] ss:$8 sps:$4 sm:$0xff]  }
  0x16   :  { %2371 = vmatprep.mubr.bf16.mxu0 %v2780_v53  ;;  %v3298_v1 = vld [vmem:[%s4924_s1 + $0x5f4] ss:$8 sps:$4 sm:$0xff]   ;;  %v3300_v2 = vld [vmem:[%s4924_s1 + $0xf0] ss:$8 sps:$4 sm:$0xff]   ;;  %v3306_v4 = vld [vmem:[%s4924_s1 + $0x104] ss:$8 sps:$4 sm:$0xff]  }
  0x17   :  { %2145 = vmatpush1.bf16.msra.mxu1 %v3240_v22  ;;  %v3301_v3 = vld [vmem:[%s4924_s1 + $0x5f0] ss:$8 sps:$4 sm:$0xff]   ;;  %v3311_v5 = vld [vmem:[%s4924_s1 + $0x604] ss:$8 sps:$4 sm:$0xff]   ;;  %v3304_v8 = vld [vmem:[%s4924_s1 + $0x100] ss:$8 sps:$4 sm:$0xff]  }
  0x18   :  { %2350 = vmatpush1.bf16.msra.mxu0 %v3241_v23  ;;  %2146 = vmatprep.subr.bf16.mxu1 %v3242_v24  ;;  %v3309_v9 = vld [vmem:[%s4924_s1 + $0x600] ss:$8 sps:$4 sm:$0xff]   ;;  %v3314_v10 = vld [vmem:[%s4924_s1 + $0x114] ss:$8 sps:$4 sm:$0xff]   ;;  %v3312_v12 = vld [vmem:[%s4924_s1 + $0x110] ss:$8 sps:$4 sm:$0xff]  }
  0x19   :  { %2351 = vmatprep.subr.bf16.mxu0 %v3244_v25  ;;  %v3317_v11 = vld [vmem:[%s4924_s1 + $0x614] ss:$8 sps:$4 sm:$0xff]   ;;  %v3315_v13 = vld [vmem:[%s4924_s1 + $0x610] ss:$8 sps:$4 sm:$0xff]   ;;  %v3320_v14 = vld [vmem:[%s4924_s1 + $0x124] ss:$8 sps:$4 sm:$0xff]  }
  0x1a   :  { %v3323_v15 = vld [vmem:[%s4924_s1 + $0x624] ss:$8 sps:$4 sm:$0xff]   ;;  %v3318_v16 = vld [vmem:[%s4924_s1 + $0x120] ss:$8 sps:$4 sm:$0xff]   ;;  %v3326_v18 = vld [vmem:[%s4924_s1 + $0x134] ss:$8 sps:$4 sm:$0xff]  }
  0x1b   :  { %2147 = vmatpush1.bf16.msra.mxu1 %v3246_v26  ;;  %v3321_v17 = vld [vmem:[%s4924_s1 + $0x620] ss:$8 sps:$4 sm:$0xff]   ;;  %v3329_v19 = vld [vmem:[%s4924_s1 + $0x634] ss:$8 sps:$4 sm:$0xff]   ;;  %v3324_v20 = vld [vmem:[%s4924_s1 + $0x130] ss:$8 sps:$4 sm:$0xff]  }
  0x1c   :  { %2352 = vmatpush1.bf16.msra.mxu0 %v3247_v27  ;;  %2148 = vmatprep.subr.bf16.mxu1 %v3248_v28  ;;  %v3327_v21 = vld [vmem:[%s4924_s1 + $0x630] ss:$8 sps:$4 sm:$0xff]   ;;  %v3332_v22 = vld [vmem:[%s4924_s1 + $0x144] ss:$8 sps:$4 sm:$0xff]   ;;  %v3330_v24 = vld [vmem:[%s4924_s1 + $0x140] ss:$8 sps:$4 sm:$0xff]  }
  0x1d   :  { %2353 = vmatprep.subr.bf16.mxu0 %v3250_v29  ;;  %v3335_v23 = vld [vmem:[%s4924_s1 + $0x644] ss:$8 sps:$4 sm:$0xff]   ;;  %v3333_v25 = vld [vmem:[%s4924_s1 + $0x640] ss:$8 sps:$4 sm:$0xff]   ;;  %v3338_v26 = vld [vmem:[%s4924_s1 + $0x154] ss:$8 sps:$4 sm:$0xff]  }
  0x1e   :  { %v3341_v27 = vld [vmem:[%s4924_s1 + $0x654] ss:$8 sps:$4 sm:$0xff]   ;;  %v3336_v28 = vld [vmem:[%s4924_s1 + $0x150] ss:$8 sps:$4 sm:$0xff]   ;;  %v3368_v50 = vld [vmem:[%s4924_s1 + $0x1a4] ss:$8 sps:$4 sm:$0xff]  }
  0x1f   :  { %2149 = vmatpush1.bf16.msra.mxu1 %v3252_v30  ;;  %v3339_v29 = vld [vmem:[%s4924_s1 + $0x650] ss:$8 sps:$4 sm:$0xff]   ;;  %v3344_v30 = vld [vmem:[%s4924_s1 + $0x164] ss:$8 sps:$4 sm:$0xff]   ;;  %v3362_v46 = vld [vmem:[%s4924_s1 + $0x194] ss:$8 sps:$4 sm:$0xff]  }
  0x20   :  { %2354 = vmatpush1.bf16.msra.mxu0 %v3253_v31  ;;  %2150 = vmatprep.subr.bf16.mxu1 %v3254_v32  ;;  %v3347_v31 = vld [vmem:[%s4924_s1 + $0x664] ss:$8 sps:$4 sm:$0xff]   ;;  %v3360_v48 = vld [vmem:[%s4924_s1 + $0x190] ss:$8 sps:$4 sm:$0xff]   ;;  %v3369_v53 = vld [vmem:[%s4924_s1 + $0x6a0] ss:$8 sps:$4 sm:$0xff]  }
  0x21   :  { %2355 = vmatprep.subr.bf16.mxu0 %v3256_v33  ;;  %v4057_v32 = vld [vmem:[%s4925_s0 + $0x8] sm:$0xff] }
  0x22   :  { %v3342_v33 = vld [vmem:[%s4924_s1 + $0x160] ss:$8 sps:$4 sm:$0xff]  }
  0x23   :  { %2151 = vmatpush1.bf16.msra.mxu1 %v3258_v34  ;;  %v3345_v34 = vld [vmem:[%s4924_s1 + $0x660] ss:$8 sps:$4 sm:$0xff]  }
  0x24   :  { %2356 = vmatpush1.bf16.msra.mxu0 %v3259_v35  ;;  %2152 = vmatprep.subr.bf16.mxu1 %v3260_v36  ;;  %v2772_v35 = vcombine.high %v4057_v32, %v4057_v32  ;;  %v4070_v36 = vld [vmem:[%s4925_s0 + $0x30] sm:$0xff] }
  0x25   :  { %2357 = vmatprep.subr.bf16.mxu0 %v3262_v37  ;;  %v3350_v37 = vld [vmem:[%s4924_s1 + $0x174] ss:$8 sps:$4 sm:$0xff]  }
  0x27   :  { %2153 = vmatpush1.bf16.msra.mxu1 %v3264_v38  ;;  %v2782_v38 = vcombine.high %v4070_v36, %v4070_v36 }
  0x28   :  { %2358 = vmatpush1.bf16.msra.mxu0 %v3265_v39  ;;  %2154 = vmatprep.subr.bf16.mxu1 %v3266_v40  ;;  %v3353_v39 = vld [vmem:[%s4924_s1 + $0x674] ss:$8 sps:$4 sm:$0xff]   ;;  %v3348_v40 = vld [vmem:[%s4924_s1 + $0x170] ss:$8 sps:$4 sm:$0xff]  }
  0x29   :  { %2359 = vmatprep.subr.bf16.mxu0 %v3268_v41  ;;  %v3351_v41 = vld [vmem:[%s4924_s1 + $0x670] ss:$8 sps:$4 sm:$0xff]  }
  0x2b   :  { %2155 = vmatpush1.bf16.msra.mxu1 %v3270_v42  ;;  %v3356_v42 = vld [vmem:[%s4924_s1 + $0x184] ss:$8 sps:$4 sm:$0xff]  }
  0x2c   :  { %2360 = vmatpush1.bf16.msra.mxu0 %v3271_v43  ;;  %2156 = vmatprep.subr.bf16.mxu1 %v3272_v44  ;;  %v3359_v43 = vld [vmem:[%s4924_s1 + $0x684] ss:$8 sps:$4 sm:$0xff]   ;;  %v3354_v44 = vld [vmem:[%s4924_s1 + $0x180] ss:$8 sps:$4 sm:$0xff]  }
  0x2d   :  { %2361 = vmatprep.subr.bf16.mxu0 %v3274_v45  ;;  %v3357_v45 = vld [vmem:[%s4924_s1 + $0x680] ss:$8 sps:$4 sm:$0xff]  }
  0x2f   :  { %2157 = vmatpush1.bf16.msra.mxu1 %v3276_v47  ;;  %v3365_v47 = vld [vmem:[%s4924_s1 + $0x694] ss:$8 sps:$4 sm:$0xff]  }
  0x30   :  { %2362 = vmatpush1.bf16.msra.mxu0 %v3277_v49  ;;  %2158 = vmatprep.subr.bf16.mxu1 %v3278_v51  ;;  %v3363_v49 = vld [vmem:[%s4924_s1 + $0x690] ss:$8 sps:$4 sm:$0xff]   ;;  %v3371_v51 = vld [vmem:[%s4924_s1 + $0x6a4] ss:$8 sps:$4 sm:$0xff]  }
  0x31   :  { %2363 = vmatprep.subr.bf16.mxu0 %v3280_v52  ;;  %v3366_v52 = vld [vmem:[%s4924_s1 + $0x1a0] ss:$8 sps:$4 sm:$0xff]  }
  0x33   :  { %2159 = vmatpush1.bf16.msra.mxu1 %v3282_v54  ;;  %v3374_v54 = vld [vmem:[%s4924_s1 + $0x1b4] ss:$8 sps:$4 sm:$0xff]  }
  0x34   :  { %2364 = vmatpush1.bf16.msra.mxu0 %v3283_v55  ;;  %2160 = vmatprep.subr.bf16.mxu1 %v3284_v56  ;;  %v3377_v55 = vld [vmem:[%s4924_s1 + $0x6b4] ss:$8 sps:$4 sm:$0xff]   ;;  %v3372_v56 = vld [vmem:[%s4924_s1 + $0x1b0] ss:$8 sps:$4 sm:$0xff]  }
  0x35   :  { %2365 = vmatprep.subr.bf16.mxu0 %v3286_v57  ;;  %v3375_v57 = vld [vmem:[%s4924_s1 + $0x6b0] ss:$8 sps:$4 sm:$0xff]  }
  0x37   :  { %2161 = vmatpush1.bf16.msra.mxu1 %v3288_v58  ;;  %v3380_v58 = vld [vmem:[%s4924_s1 + $0x1c4] ss:$8 sps:$4 sm:$0xff]  }
  0x38   :  { %2366 = vmatpush1.bf16.msra.mxu0 %v3289_v59  ;;  %2162 = vmatprep.subr.bf16.mxu1 %v3290_v60  ;;  %v3383_v59 = vld [vmem:[%s4924_s1 + $0x6c4] ss:$8 sps:$4 sm:$0xff]   ;;  %v3378_v60 = vld [vmem:[%s4924_s1 + $0x1c0] ss:$8 sps:$4 sm:$0xff]  }
  0x39   :  { %2367 = vmatprep.subr.bf16.mxu0 %v3292_v61  ;;  %v3381_v61 = vld [vmem:[%s4924_s1 + $0x6c0] ss:$8 sps:$4 sm:$0xff]  }
  0x3b   :  { %2163 = vmatpush1.bf16.msra.mxu1 %v3294_v62  ;;  %v3386_v62 = vld [vmem:[%s4924_s1 + $0x1d4] ss:$8 sps:$4 sm:$0xff]  }
  0x3c   :  { %2368 = vmatpush1.bf16.msra.mxu0 %v3295_v63  ;;  %2164 = vmatprep.subr.bf16.mxu1 %v3296_v0  ;;  %v3389_v63 = vld [vmem:[%s4924_s1 + $0x6d4] ss:$8 sps:$4 sm:$0xff]   ;;  %v3384_v0 = vld [vmem:[%s4924_s1 + $0x1d0] ss:$8 sps:$4 sm:$0xff]  }
  0x3d   :  { %2369 = vmatprep.subr.bf16.mxu0 %v3298_v1  ;;  %v3387_v1 = vld [vmem:[%s4924_s1 + $0x6d0] ss:$8 sps:$4 sm:$0xff]  }
  0x3f   :  { %2165 = vmatpush1.bf16.msra.mxu1 %v3300_v2  ;;  %v3392_v2 = vld [vmem:[%s4924_s1 + $0x1e4] ss:$8 sps:$4 sm:$0xff]  }
  0x40   :  { %2370 = vmatpush1.bf16.msra.mxu0 %v3301_v3  ;;  %2175 = vmatprep.subr.bf16.mxu1 %v3306_v4  ;;  %v3395_v3 = vld [vmem:[%s4924_s1 + $0x6e4] ss:$8 sps:$4 sm:$0xff]   ;;  %v3390_v4 = vld [vmem:[%s4924_s1 + $0x1e0] ss:$8 sps:$4 sm:$0xff]  }
  0x41   :  { %2380 = vmatprep.subr.bf16.mxu0 %v3311_v5  ;;  %v3393_v5 = vld [vmem:[%s4924_s1 + $0x6e0] ss:$8 sps:$4 sm:$0xff]  }
  0x42   :  { %2167 = vmatmul.mubr.bf16.vlgmr.msra.gmra.mrb[0].mxu1 %v2769_v6  ;;  %v3398_v6 = vld [vmem:[%s4924_s1 + $0x1f4] ss:$8 sps:$4 sm:$0xff]  }
  0x43   :  { %2372 = vmatmul.mubr.bf16.vlgmr.msra.gmra.mrb[0].mxu0 %v2779_v7  ;;  %2176 = vmatpush1.bf16.msra.mxu1 %v3304_v8  ;;  %v3401_v7 = vld [vmem:[%s4924_s1 + $0x6f4] ss:$8 sps:$4 sm:$0xff]   ;;  %v3396_v8 = vld [vmem:[%s4924_s1 + $0x1f0] ss:$8 sps:$4 sm:$0xff]  }
  0x44   :  { %2381 = vmatpush1.bf16.msra.mxu0 %v3309_v9  ;;  %2177 = vmatprep.subr.bf16.mxu1 %v3314_v10  ;;  %v3399_v9 = vld [vmem:[%s4924_s1 + $0x6f0] ss:$8 sps:$4 sm:$0xff]   ;;  %v3406_v10 = vld [vmem:[%s4924_s1 + $0x204] ss:$8 sps:$4 sm:$0xff]  }
  0x45   :  { %2382 = vmatprep.subr.bf16.mxu0 %v3317_v11  ;;  %2207 = vmatprep.mubr.bf16.mxu1 %v2772_v35  ;;  %v3411_v11 = vld [vmem:[%s4924_s1 + $0x704] ss:$8 sps:$4 sm:$0xff]   ;;  %v3433_v35 = vld [vmem:[%s4924_s1 + $0x740] ss:$8 sps:$4 sm:$0xff]  }
  0x46   :  { %2412 = vmatprep.mubr.bf16.mxu0 %v2782_v38  ;;  %v3436_v38 = vld [vmem:[%s4924_s1 + $0x250] ss:$8 sps:$4 sm:$0xff]  }
  0x47   :  { %2178 = vmatpush1.bf16.msra.mxu1 %v3312_v12  ;;  %v2771_v12 = vcombine.low %v4057_v32, %v4057_v32  ;;  %v3432_v32 = vld [vmem:[%s4924_s1 + $0x244] ss:$8 sps:$4 sm:$0xff]  }
  0x48   :  { %2383 = vmatpush1.bf16.msra.mxu0 %v3315_v13  ;;  %2179 = vmatprep.subr.bf16.mxu1 %v3320_v14  ;;  %v3404_v13 = vld [vmem:[%s4924_s1 + $0x200] ss:$8 sps:$4 sm:$0xff]   ;;  %v2781_v14 = vcombine.low %v4070_v36, %v4070_v36  ;;  %v3438_v36 = vld [vmem:[%s4924_s1 + $0x254] ss:$8 sps:$4 sm:$0xff]  }
  0x49   :  { %2384 = vmatprep.subr.bf16.mxu0 %v3323_v15  ;;  %v3409_v15 = vld [vmem:[%s4924_s1 + $0x700] ss:$8 sps:$4 sm:$0xff]  }
  0x4b   :  { %2180 = vmatpush1.bf16.msra.mxu1 %v3318_v16  ;;  %v3414_v16 = vld [vmem:[%s4924_s1 + $0x214] ss:$8 sps:$4 sm:$0xff]  }
  0x4c   :  { %2385 = vmatpush1.bf16.msra.mxu0 %v3321_v17  ;;  %2181 = vmatprep.subr.bf16.mxu1 %v3326_v18  ;;  %v3417_v17 = vld [vmem:[%s4924_s1 + $0x714] ss:$8 sps:$4 sm:$0xff]  }
  0x4d   :  { %2386 = vmatprep.subr.bf16.mxu0 %v3329_v19  ;;  %v4207_v18 = vld [vmem:[%s4925_s0 + $0x10] sm:$0xff] }
  0x4e   :  { %v2774_v19 = vcombine.high %v4207_v18, %v4207_v18 }
  0x4f   :  { %2182 = vmatpush1.bf16.msra.mxu1 %v3324_v20  ;;  %v4214_v20 = vld [vmem:[%s4925_s0 + $0x38] sm:$0xff] }
  0x50   :  { %2387 = vmatpush1.bf16.msra.mxu0 %v3327_v21  ;;  %2183 = vmatprep.subr.bf16.mxu1 %v3332_v22  ;;  %v3412_v21 = vld [vmem:[%s4924_s1 + $0x210] ss:$8 sps:$4 sm:$0xff]  }
  0x51   :  { %2388 = vmatprep.subr.bf16.mxu0 %v3335_v23  ;;  %v3415_v22 = vld [vmem:[%s4924_s1 + $0x710] ss:$8 sps:$4 sm:$0xff]   ;;  %v2784_v23 = vcombine.high %v4214_v20, %v4214_v20 }
  0x53   :  { %2184 = vmatpush1.bf16.msra.mxu1 %v3330_v24  ;;  %v3420_v24 = vld [vmem:[%s4924_s1 + $0x224] ss:$8 sps:$4 sm:$0xff]  }
  0x54   :  { %2389 = vmatpush1.bf16.msra.mxu0 %v3333_v25  ;;  %2185 = vmatprep.subr.bf16.mxu1 %v3338_v26  ;;  %v3423_v25 = vld [vmem:[%s4924_s1 + $0x724] ss:$8 sps:$4 sm:$0xff]   ;;  %v3418_v26 = vld [vmem:[%s4924_s1 + $0x220] ss:$8 sps:$4 sm:$0xff]  }
  0x55   :  { %2390 = vmatprep.subr.bf16.mxu0 %v3341_v27  ;;  %v3421_v27 = vld [vmem:[%s4924_s1 + $0x720] ss:$8 sps:$4 sm:$0xff]  }
  0x57   :  { %2186 = vmatpush1.bf16.msra.mxu1 %v3336_v28  ;;  %v3426_v28 = vld [vmem:[%s4924_s1 + $0x234] ss:$8 sps:$4 sm:$0xff]  }
  0x58   :  { %2391 = vmatpush1.bf16.msra.mxu0 %v3339_v29  ;;  %2187 = vmatprep.subr.bf16.mxu1 %v3344_v30  ;;  %v3429_v29 = vld [vmem:[%s4924_s1 + $0x734] ss:$8 sps:$4 sm:$0xff]   ;;  %v3424_v30 = vld [vmem:[%s4924_s1 + $0x230] ss:$8 sps:$4 sm:$0xff]  }
  0x59   :  { %2392 = vmatprep.subr.bf16.mxu0 %v3347_v31  ;;  %v3427_v31 = vld [vmem:[%s4924_s1 + $0x730] ss:$8 sps:$4 sm:$0xff]  }
  0x5b   :  { %2188 = vmatpush1.bf16.msra.mxu1 %v3342_v33  ;;  %v3435_v33 = vld [vmem:[%s4924_s1 + $0x744] ss:$8 sps:$4 sm:$0xff]  }
  0x5c   :  { %2393 = vmatpush1.bf16.msra.mxu0 %v3345_v34  ;;  %2189 = vmatprep.subr.bf16.mxu1 %v3350_v37  ;;  %v3430_v34 = vld [vmem:[%s4924_s1 + $0x240] ss:$8 sps:$4 sm:$0xff]   ;;  %v3441_v37 = vld [vmem:[%s4924_s1 + $0x754] ss:$8 sps:$4 sm:$0xff]  }
  0x5d   :  { %2394 = vmatprep.subr.bf16.mxu0 %v3353_v39  ;;  %v3439_v39 = vld [vmem:[%s4924_s1 + $0x750] ss:$8 sps:$4 sm:$0xff]  }
  0x5f   :  { %2190 = vmatpush1.bf16.msra.mxu1 %v3348_v40  ;;  %v3444_v40 = vld [vmem:[%s4924_s1 + $0x264] ss:$8 sps:$4 sm:$0xff]  }
  0x60   :  { %2395 = vmatpush1.bf16.msra.mxu0 %v3351_v41  ;;  %2191 = vmatprep.subr.bf16.mxu1 %v3356_v42  ;;  %v3447_v41 = vld [vmem:[%s4924_s1 + $0x764] ss:$8 sps:$4 sm:$0xff]   ;;  %v3442_v42 = vld [vmem:[%s4924_s1 + $0x260] ss:$8 sps:$4 sm:$0xff]  }
  0x61   :  { %2396 = vmatprep.subr.bf16.mxu0 %v3359_v43  ;;  %v3445_v43 = vld [vmem:[%s4924_s1 + $0x760] ss:$8 sps:$4 sm:$0xff]  }
  0x63   :  { %2192 = vmatpush1.bf16.msra.mxu1 %v3354_v44  ;;  %v3450_v44 = vld [vmem:[%s4924_s1 + $0x274] ss:$8 sps:$4 sm:$0xff]  }
  0x64   :  { %2397 = vmatpush1.bf16.msra.mxu0 %v3357_v45  ;;  %2193 = vmatprep.subr.bf16.mxu1 %v3362_v46  ;;  %v3453_v45 = vld [vmem:[%s4924_s1 + $0x774] ss:$8 sps:$4 sm:$0xff]   ;;  %v3448_v46 = vld [vmem:[%s4924_s1 + $0x270] ss:$8 sps:$4 sm:$0xff]  }
  0x65   :  { %2398 = vmatprep.subr.bf16.mxu0 %v3365_v47  ;;  %v3451_v47 = vld [vmem:[%s4924_s1 + $0x770] ss:$8 sps:$4 sm:$0xff]  }
  0x67   :  { %2194 = vmatpush1.bf16.msra.mxu1 %v3360_v48  ;;  %v3456_v48 = vld [vmem:[%s4924_s1 + $0x284] ss:$8 sps:$4 sm:$0xff]  }
  0x68   :  { %2399 = vmatpush1.bf16.msra.mxu0 %v3363_v49  ;;  %2195 = vmatprep.subr.bf16.mxu1 %v3368_v50  ;;  %v3459_v49 = vld [vmem:[%s4924_s1 + $0x784] ss:$8 sps:$4 sm:$0xff]   ;;  %v3454_v50 = vld [vmem:[%s4924_s1 + $0x280] ss:$8 sps:$4 sm:$0xff]  }
  0x69   :  { %2400 = vmatprep.subr.bf16.mxu0 %v3371_v51  ;;  %v3457_v51 = vld [vmem:[%s4924_s1 + $0x780] ss:$8 sps:$4 sm:$0xff]  }
  0x6b   :  { %2196 = vmatpush1.bf16.msra.mxu1 %v3366_v52  ;;  %v3462_v52 = vld [vmem:[%s4924_s1 + $0x294] ss:$8 sps:$4 sm:$0xff]  }
  0x6c   :  { %2401 = vmatpush1.bf16.msra.mxu0 %v3369_v53  ;;  %2197 = vmatprep.subr.bf16.mxu1 %v3374_v54  ;;  %v3465_v53 = vld [vmem:[%s4924_s1 + $0x794] ss:$8 sps:$4 sm:$0xff]   ;;  %v3460_v54 = vld [vmem:[%s4924_s1 + $0x290] ss:$8 sps:$4 sm:$0xff]  }
  0x6d   :  { %2402 = vmatprep.subr.bf16.mxu0 %v3377_v55  ;;  %v3463_v55 = vld [vmem:[%s4924_s1 + $0x790] ss:$8 sps:$4 sm:$0xff]  }
  0x6f   :  { %2198 = vmatpush1.bf16.msra.mxu1 %v3372_v56  ;;  %v3468_v56 = vld [vmem:[%s4924_s1 + $0x2a4] ss:$8 sps:$4 sm:$0xff]  }
  0x70   :  { %2403 = vmatpush1.bf16.msra.mxu0 %v3375_v57  ;;  %2199 = vmatprep.subr.bf16.mxu1 %v3380_v58  ;;  %v3471_v57 = vld [vmem:[%s4924_s1 + $0x7a4] ss:$8 sps:$4 sm:$0xff]   ;;  %v3466_v58 = vld [vmem:[%s4924_s1 + $0x2a0] ss:$8 sps:$4 sm:$0xff]  }
  0x71   :  { %2404 = vmatprep.subr.bf16.mxu0 %v3383_v59  ;;  %v3469_v59 = vld [vmem:[%s4924_s1 + $0x7a0] ss:$8 sps:$4 sm:$0xff]  }
  0x73   :  { %2200 = vmatpush1.bf16.msra.mxu1 %v3378_v60  ;;  %v3474_v60 = vld [vmem:[%s4924_s1 + $0x2b4] ss:$8 sps:$4 sm:$0xff]  }
  0x74   :  { %2405 = vmatpush1.bf16.msra.mxu0 %v3381_v61  ;;  %2201 = vmatprep.subr.bf16.mxu1 %v3386_v62  ;;  %v3477_v61 = vld [vmem:[%s4924_s1 + $0x7b4] ss:$8 sps:$4 sm:$0xff]   ;;  %v3472_v62 = vld [vmem:[%s4924_s1 + $0x2b0] ss:$8 sps:$4 sm:$0xff]  }
  0x75   :  { %2406 = vmatprep.subr.bf16.mxu0 %v3389_v63  ;;  %v3475_v63 = vld [vmem:[%s4924_s1 + $0x7b0] ss:$8 sps:$4 sm:$0xff]  }
  0x77   :  { %2202 = vmatpush1.bf16.msra.mxu1 %v3384_v0  ;;  %v3480_v0 = vld [vmem:[%s4924_s1 + $0x2c4] ss:$8 sps:$4 sm:$0xff]  }
  0x78   :  { %2407 = vmatpush1.bf16.msra.mxu0 %v3387_v1  ;;  %2203 = vmatprep.subr.bf16.mxu1 %v3392_v2  ;;  %v3483_v1 = vld [vmem:[%s4924_s1 + $0x7c4] ss:$8 sps:$4 sm:$0xff]   ;;  %v3478_v2 = vld [vmem:[%s4924_s1 + $0x2c0] ss:$8 sps:$4 sm:$0xff]  }
  0x79   :  { %2408 = vmatprep.subr.bf16.mxu0 %v3395_v3  ;;  %v3481_v3 = vld [vmem:[%s4924_s1 + $0x7c0] ss:$8 sps:$4 sm:$0xff]  }
  0x7b   :  { %2204 = vmatpush1.bf16.msra.mxu1 %v3390_v4  ;;  %v3486_v4 = vld [vmem:[%s4924_s1 + $0x2d4] ss:$8 sps:$4 sm:$0xff]  }
  0x7c   :  { %2409 = vmatpush1.bf16.msra.mxu0 %v3393_v5  ;;  %2205 = vmatprep.subr.bf16.mxu1 %v3398_v6  ;;  %v3489_v5 = vld [vmem:[%s4924_s1 + $0x7d4] ss:$8 sps:$4 sm:$0xff]   ;;  %v3484_v6 = vld [vmem:[%s4924_s1 + $0x2d0] ss:$8 sps:$4 sm:$0xff]  }
  0x7d   :  { %2410 = vmatprep.subr.bf16.mxu0 %v3401_v7  ;;  %v3487_v7 = vld [vmem:[%s4924_s1 + $0x7d0] ss:$8 sps:$4 sm:$0xff]  }
  0x7f   :  { %2206 = vmatpush1.bf16.msra.mxu1 %v3396_v8  ;;  %v3492_v8 = vld [vmem:[%s4924_s1 + $0x2e4] ss:$8 sps:$4 sm:$0xff]  }
  0x80   :  { %2411 = vmatpush1.bf16.msra.mxu0 %v3399_v9  ;;  %2216 = vmatprep.subr.bf16.mxu1 %v3406_v10  ;;  %v3495_v9 = vld [vmem:[%s4924_s1 + $0x7e4] ss:$8 sps:$4 sm:$0xff]   ;;  %v3490_v10 = vld [vmem:[%s4924_s1 + $0x2e0] ss:$8 sps:$4 sm:$0xff]  }
  0x81   :  { %2421 = vmatprep.subr.bf16.mxu0 %v3411_v11  ;;  %v3493_v11 = vld [vmem:[%s4924_s1 + $0x7e0] ss:$8 sps:$4 sm:$0xff]  }
  0x82   :  { %2208 = vmatmul.mubr.bf16.vlgmr.msra.gmra.mrb[0].mxu1 %v2771_v12  ;;  %v3498_v12 = vld [vmem:[%s4924_s1 + $0x2f4] ss:$8 sps:$4 sm:$0xff]  }
  0x83   :  { %2413 = vmatmul.mubr.bf16.vlgmr.msra.gmra.mrb[0].mxu0 %v2781_v14  ;;  %2217 = vmatpush1.bf16.msra.mxu1 %v3404_v13  ;;  %v3501_v13 = vld [vmem:[%s4924_s1 + $0x7f4] ss:$8 sps:$4 sm:$0xff]   ;;  %v3496_v14 = vld [vmem:[%s4924_s1 + $0x2f0] ss:$8 sps:$4 sm:$0xff]  }
  0x84   :  { %2422 = vmatpush1.bf16.msra.mxu0 %v3409_v15  ;;  %2218 = vmatprep.subr.bf16.mxu1 %v3414_v16  ;;  %v3499_v15 = vld [vmem:[%s4924_s1 + $0x7f0] ss:$8 sps:$4 sm:$0xff]   ;;  %v3506_v16 = vld [vmem:[%s4924_s1 + $0x304] ss:$8 sps:$4 sm:$0xff]  }
  0x85   :  { %2423 = vmatprep.subr.bf16.mxu0 %v3417_v17  ;;  %2248 = vmatprep.mubr.bf16.mxu1 %v2774_v19  ;;  %v3511_v17 = vld [vmem:[%s4924_s1 + $0x804] ss:$8 sps:$4 sm:$0xff]   ;;  %v3504_v19 = vld [vmem:[%s4924_s1 + $0x300] ss:$8 sps:$4 sm:$0xff]  }
  0x86   :  { %2453 = vmatprep.mubr.bf16.mxu0 %v2784_v23  ;;  %v2783_v23 = vcombine.low %v4214_v20, %v4214_v20 }
  0x87   :  { %2219 = vmatpush1.bf16.msra.mxu1 %v3412_v21  ;;  %v3509_v21 = vld [vmem:[%s4924_s1 + $0x800] ss:$8 sps:$4 sm:$0xff]  }
  0x88   :  { %2424 = vmatpush1.bf16.msra.mxu0 %v3415_v22  ;;  %2220 = vmatprep.subr.bf16.mxu1 %v3420_v24  ;;  %v2773_v22 = vcombine.low %v4207_v18, %v4207_v18  ;;  %v4411_v24 = vld [vmem:[%s4925_s0 + $0x18] sm:$0xff] }
  0x89   :  { %2425 = vmatprep.subr.bf16.mxu0 %v3423_v25  ;;  %v4416_v25 = vld [vmem:[%s4925_s0 + $0x40] sm:$0xff]  ;;  %v3517_v18 = vld [vmem:[%s4924_s1 + $0x814] ss:$8 sps:$4 sm:$0xff]   ;;  %v2776_v20 = vcombine.high %v4411_v24, %v4411_v24 }
  0x8b   :  { %2221 = vmatpush1.bf16.msra.mxu1 %v3418_v26  ;;  %v3514_v26 = vld [vmem:[%s4924_s1 + $0x314] ss:$8 sps:$4 sm:$0xff]  }
  0x8c   :  { %2426 = vmatpush1.bf16.msra.mxu0 %v3421_v27  ;;  %2222 = vmatprep.subr.bf16.mxu1 %v3426_v28  ;;  %v2786_v27 = vcombine.high %v4416_v25, %v4416_v25  ;;  %v3512_v28 = vld [vmem:[%s4924_s1 + $0x310] ss:$8 sps:$4 sm:$0xff]  }
  0x8d   :  { %2427 = vmatprep.subr.bf16.mxu0 %v3429_v29  ;;  %v3515_v29 = vld [vmem:[%s4924_s1 + $0x810] ss:$8 sps:$4 sm:$0xff]  }
  0x8f   :  { %2223 = vmatpush1.bf16.msra.mxu1 %v3424_v30  ;;  %v3520_v30 = vld [vmem:[%s4924_s1 + $0x324] ss:$8 sps:$4 sm:$0xff]  }
  0x90   :  { %2428 = vmatpush1.bf16.msra.mxu0 %v3427_v31  ;;  %2224 = vmatprep.subr.bf16.mxu1 %v3432_v32  ;;  %v3523_v31 = vld [vmem:[%s4924_s1 + $0x824] ss:$8 sps:$4 sm:$0xff]   ;;  %v3518_v32 = vld [vmem:[%s4924_s1 + $0x320] ss:$8 sps:$4 sm:$0xff]  }
  0x91   :  { %2429 = vmatprep.subr.bf16.mxu0 %v3435_v33  ;;  %v3521_v33 = vld [vmem:[%s4924_s1 + $0x820] ss:$8 sps:$4 sm:$0xff]  }
  0x93   :  { %2225 = vmatpush1.bf16.msra.mxu1 %v3430_v34  ;;  %v3526_v34 = vld [vmem:[%s4924_s1 + $0x334] ss:$8 sps:$4 sm:$0xff]  }
  0x94   :  { %2430 = vmatpush1.bf16.msra.mxu0 %v3433_v35  ;;  %2226 = vmatprep.subr.bf16.mxu1 %v3438_v36  ;;  %v3529_v35 = vld [vmem:[%s4924_s1 + $0x834] ss:$8 sps:$4 sm:$0xff]   ;;  %v3524_v36 = vld [vmem:[%s4924_s1 + $0x330] ss:$8 sps:$4 sm:$0xff]  }
  0x95   :  { %2431 = vmatprep.subr.bf16.mxu0 %v3441_v37  ;;  %v3527_v37 = vld [vmem:[%s4924_s1 + $0x830] ss:$8 sps:$4 sm:$0xff]  }
  0x97   :  { %2227 = vmatpush1.bf16.msra.mxu1 %v3436_v38  ;;  %v3532_v38 = vld [vmem:[%s4924_s1 + $0x344] ss:$8 sps:$4 sm:$0xff]  }
  0x98   :  { %2432 = vmatpush1.bf16.msra.mxu0 %v3439_v39  ;;  %2228 = vmatprep.subr.bf16.mxu1 %v3444_v40  ;;  %v3535_v39 = vld [vmem:[%s4924_s1 + $0x844] ss:$8 sps:$4 sm:$0xff]   ;;  %v3530_v40 = vld [vmem:[%s4924_s1 + $0x340] ss:$8 sps:$4 sm:$0xff]  }
  0x99   :  { %2433 = vmatprep.subr.bf16.mxu0 %v3447_v41  ;;  %v3533_v41 = vld [vmem:[%s4924_s1 + $0x840] ss:$8 sps:$4 sm:$0xff]  }
  0x9b   :  { %2229 = vmatpush1.bf16.msra.mxu1 %v3442_v42  ;;  %v3538_v42 = vld [vmem:[%s4924_s1 + $0x354] ss:$8 sps:$4 sm:$0xff]  }
  0x9c   :  { %2434 = vmatpush1.bf16.msra.mxu0 %v3445_v43  ;;  %2230 = vmatprep.subr.bf16.mxu1 %v3450_v44  ;;  %v3541_v43 = vld [vmem:[%s4924_s1 + $0x854] ss:$8 sps:$4 sm:$0xff]   ;;  %v3536_v44 = vld [vmem:[%s4924_s1 + $0x350] ss:$8 sps:$4 sm:$0xff]  }
  0x9d   :  { %2435 = vmatprep.subr.bf16.mxu0 %v3453_v45  ;;  %v3539_v45 = vld [vmem:[%s4924_s1 + $0x850] ss:$8 sps:$4 sm:$0xff]  }
  0x9f   :  { %2231 = vmatpush1.bf16.msra.mxu1 %v3448_v46  ;;  %v3544_v46 = vld [vmem:[%s4924_s1 + $0x364] ss:$8 sps:$4 sm:$0xff]  }
  0xa0   :  { %2436 = vmatpush1.bf16.msra.mxu0 %v3451_v47  ;;  %2232 = vmatprep.subr.bf16.mxu1 %v3456_v48  ;;  %v3547_v47 = vld [vmem:[%s4924_s1 + $0x864] ss:$8 sps:$4 sm:$0xff]   ;;  %v3542_v48 = vld [vmem:[%s4924_s1 + $0x360] ss:$8 sps:$4 sm:$0xff]  }
  0xa1   :  { %2437 = vmatprep.subr.bf16.mxu0 %v3459_v49  ;;  %v3545_v49 = vld [vmem:[%s4924_s1 + $0x860] ss:$8 sps:$4 sm:$0xff]  }
  0xa3   :  { %2233 = vmatpush1.bf16.msra.mxu1 %v3454_v50  ;;  %v3550_v50 = vld [vmem:[%s4924_s1 + $0x374] ss:$8 sps:$4 sm:$0xff]  }
  0xa4   :  { %2438 = vmatpush1.bf16.msra.mxu0 %v3457_v51  ;;  %2234 = vmatprep.subr.bf16.mxu1 %v3462_v52  ;;  %v3553_v51 = vld [vmem:[%s4924_s1 + $0x874] ss:$8 sps:$4 sm:$0xff]   ;;  %v3548_v52 = vld [vmem:[%s4924_s1 + $0x370] ss:$8 sps:$4 sm:$0xff]  }
  0xa5   :  { %2439 = vmatprep.subr.bf16.mxu0 %v3465_v53  ;;  %v3551_v53 = vld [vmem:[%s4924_s1 + $0x870] ss:$8 sps:$4 sm:$0xff]  }
  0xa7   :  { %2235 = vmatpush1.bf16.msra.mxu1 %v3460_v54  ;;  %v3556_v54 = vld [vmem:[%s4924_s1 + $0x384] ss:$8 sps:$4 sm:$0xff]  }
  0xa8   :  { %2440 = vmatpush1.bf16.msra.mxu0 %v3463_v55  ;;  %2236 = vmatprep.subr.bf16.mxu1 %v3468_v56  ;;  %v3559_v55 = vld [vmem:[%s4924_s1 + $0x884] ss:$8 sps:$4 sm:$0xff]   ;;  %v3554_v56 = vld [vmem:[%s4924_s1 + $0x380] ss:$8 sps:$4 sm:$0xff]  }
  0xa9   :  { %2441 = vmatprep.subr.bf16.mxu0 %v3471_v57  ;;  %v3557_v57 = vld [vmem:[%s4924_s1 + $0x880] ss:$8 sps:$4 sm:$0xff]  }
  0xab   :  { %2237 = vmatpush1.bf16.msra.mxu1 %v3466_v58  ;;  %v3562_v58 = vld [vmem:[%s4924_s1 + $0x394] ss:$8 sps:$4 sm:$0xff]  }
  0xac   :  { %2442 = vmatpush1.bf16.msra.mxu0 %v3469_v59  ;;  %2238 = vmatprep.subr.bf16.mxu1 %v3474_v60  ;;  %v3565_v59 = vld [vmem:[%s4924_s1 + $0x894] ss:$8 sps:$4 sm:$0xff]   ;;  %v3560_v60 = vld [vmem:[%s4924_s1 + $0x390] ss:$8 sps:$4 sm:$0xff]  }
  0xad   :  { %2443 = vmatprep.subr.bf16.mxu0 %v3477_v61  ;;  %v3563_v61 = vld [vmem:[%s4924_s1 + $0x890] ss:$8 sps:$4 sm:$0xff]  }
  0xaf   :  { %2239 = vmatpush1.bf16.msra.mxu1 %v3472_v62  ;;  %v3568_v62 = vld [vmem:[%s4924_s1 + $0x3a4] ss:$8 sps:$4 sm:$0xff]  }
  0xb0   :  { %2444 = vmatpush1.bf16.msra.mxu0 %v3475_v63  ;;  %2240 = vmatprep.subr.bf16.mxu1 %v3480_v0  ;;  %v3571_v63 = vld [vmem:[%s4924_s1 + $0x8a4] ss:$8 sps:$4 sm:$0xff]   ;;  %v3566_v0 = vld [vmem:[%s4924_s1 + $0x3a0] ss:$8 sps:$4 sm:$0xff]  }
  0xb1   :  { %2445 = vmatprep.subr.bf16.mxu0 %v3483_v1  ;;  %v3569_v1 = vld [vmem:[%s4924_s1 + $0x8a0] ss:$8 sps:$4 sm:$0xff]  }
  0xb3   :  { %2241 = vmatpush1.bf16.msra.mxu1 %v3478_v2  ;;  %v3574_v2 = vld [vmem:[%s4924_s1 + $0x3b4] ss:$8 sps:$4 sm:$0xff]  }
  0xb4   :  { %2446 = vmatpush1.bf16.msra.mxu0 %v3481_v3  ;;  %2242 = vmatprep.subr.bf16.mxu1 %v3486_v4  ;;  %v3577_v3 = vld [vmem:[%s4924_s1 + $0x8b4] ss:$8 sps:$4 sm:$0xff]   ;;  %v3572_v4 = vld [vmem:[%s4924_s1 + $0x3b0] ss:$8 sps:$4 sm:$0xff]  }
  0xb5   :  { %2447 = vmatprep.subr.bf16.mxu0 %v3489_v5  ;;  %v3575_v5 = vld [vmem:[%s4924_s1 + $0x8b0] ss:$8 sps:$4 sm:$0xff]  }
  0xb7   :  { %2243 = vmatpush1.bf16.msra.mxu1 %v3484_v6  ;;  %v3580_v6 = vld [vmem:[%s4924_s1 + $0x3c4] ss:$8 sps:$4 sm:$0xff]  }
  0xb8   :  { %2448 = vmatpush1.bf16.msra.mxu0 %v3487_v7  ;;  %2244 = vmatprep.subr.bf16.mxu1 %v3492_v8  ;;  %v3583_v7 = vld [vmem:[%s4924_s1 + $0x8c4] ss:$8 sps:$4 sm:$0xff]   ;;  %v3578_v8 = vld [vmem:[%s4924_s1 + $0x3c0] ss:$8 sps:$4 sm:$0xff]  }
  0xb9   :  { %2449 = vmatprep.subr.bf16.mxu0 %v3495_v9  ;;  %v3581_v9 = vld [vmem:[%s4924_s1 + $0x8c0] ss:$8 sps:$4 sm:$0xff]  }
  0xbb   :  { %2245 = vmatpush1.bf16.msra.mxu1 %v3490_v10  ;;  %v3586_v10 = vld [vmem:[%s4924_s1 + $0x3d4] ss:$8 sps:$4 sm:$0xff]  }
  0xbc   :  { %2450 = vmatpush1.bf16.msra.mxu0 %v3493_v11  ;;  %2246 = vmatprep.subr.bf16.mxu1 %v3498_v12  ;;  %v3589_v11 = vld [vmem:[%s4924_s1 + $0x8d4] ss:$8 sps:$4 sm:$0xff]   ;;  %v3584_v12 = vld [vmem:[%s4924_s1 + $0x3d0] ss:$8 sps:$4 sm:$0xff]  }
  0xbd   :  { %2451 = vmatprep.subr.bf16.mxu0 %v3501_v13  ;;  %v3587_v13 = vld [vmem:[%s4924_s1 + $0x8d0] ss:$8 sps:$4 sm:$0xff]  }
  0xbf   :  { %2247 = vmatpush1.bf16.msra.mxu1 %v3496_v14  ;;  %v3592_v14 = vld [vmem:[%s4924_s1 + $0x3e4] ss:$8 sps:$4 sm:$0xff]  }
  0xc0   :  { %2452 = vmatpush1.bf16.msra.mxu0 %v3499_v15  ;;  %2257 = vmatprep.subr.bf16.mxu1 %v3506_v16  ;;  %v3595_v15 = vld [vmem:[%s4924_s1 + $0x8e4] ss:$8 sps:$4 sm:$0xff]   ;;  %v3590_v16 = vld [vmem:[%s4924_s1 + $0x3e0] ss:$8 sps:$4 sm:$0xff]  }
  0xc1   :  { %2462 = vmatprep.subr.bf16.mxu0 %v3511_v17  ;;  %v3593_v17 = vld [vmem:[%s4924_s1 + $0x8e0] ss:$8 sps:$4 sm:$0xff]  }
  0xc2   :  { %2249 = vmatmul.mubr.bf16.vlgmr.msra.gmra.mrb[0].mxu1 %v2773_v22  ;;  %v3596_v22 = vld [vmem:[%s4924_s1 + $0x3f0] ss:$8 sps:$4 sm:$0xff]  }
  0xc3   :  { %2454 = vmatmul.mubr.bf16.vlgmr.msra.gmra.mrb[0].mxu0 %v2783_v23  ;;  %2258 = vmatpush1.bf16.msra.mxu1 %v3504_v19  ;;  %v3598_v19 = vld [vmem:[%s4924_s1 + $0x3f4] ss:$8 sps:$4 sm:$0xff]   ;;  %v3599_v23 = vld [vmem:[%s4924_s1 + $0x8f0] ss:$8 sps:$4 sm:$0xff]  }
  0xc4   :  { %2463 = vmatpush1.bf16.msra.mxu0 %v3509_v21  ;;  %2259 = vmatprep.subr.bf16.mxu1 %v3514_v26  ;;  %v3601_v21 = vld [vmem:[%s4924_s1 + $0x8f4] ss:$8 sps:$4 sm:$0xff]   ;;  %v3606_v26 = vld [vmem:[%s4924_s1 + $0x404] ss:$8 sps:$4 sm:$0xff]  }
  0xc5   :  { %2464 = vmatprep.subr.bf16.mxu0 %v3517_v18  ;;  %2289 = vmatprep.mubr.bf16.mxu1 %v2776_v20  ;;  %v3611_v18 = vld [vmem:[%s4924_s1 + $0x904] ss:$8 sps:$4 sm:$0xff]   ;;  %v2775_v20 = vcombine.low %v4411_v24, %v4411_v24  ;;  %v3609_v24 = vld [vmem:[%s4924_s1 + $0x900] ss:$8 sps:$4 sm:$0xff]  }
  0xc6   :  { %2494 = vmatprep.mubr.bf16.mxu0 %v2786_v27  ;;  %v2785_v27 = vcombine.low %v4416_v25, %v4416_v25  ;;  %v3614_v25 = vld [vmem:[%s4924_s1 + $0x414] ss:$8 sps:$4 sm:$0xff]  }
  0xc7   :  { %2260 = vmatpush1.bf16.msra.mxu1 %v3512_v28  ;;  %v4615_v28 = vld [vmem:[%s4925_s0 + $0x20] sm:$0xff] }
  0xc8   :  { %2465 = vmatpush1.bf16.msra.mxu0 %v3515_v29  ;;  %2261 = vmatprep.subr.bf16.mxu1 %v3520_v30  ;;  %v4620_v29 = vld [vmem:[%s4925_s0 + $0x48] sm:$0xff] }
  0xc9   :  { %2466 = vmatprep.subr.bf16.mxu0 %v3523_v31  ;;  %v3604_v30 = vld [vmem:[%s4924_s1 + $0x400] ss:$8 sps:$4 sm:$0xff]   ;;  %v3617_v31 = vld [vmem:[%s4924_s1 + $0x914] ss:$8 sps:$4 sm:$0xff]  }
  0xcb   :  { %2262 = vmatpush1.bf16.msra.mxu1 %v3518_v32  ;;  %v2778_v32 = vcombine.high %v4615_v28, %v4615_v28 }
  0xcc   :  { %2467 = vmatpush1.bf16.msra.mxu0 %v3521_v33  ;;  %2263 = vmatprep.subr.bf16.mxu1 %v3526_v34  ;;  %v2788_v33 = vcombine.high %v4620_v29, %v4620_v29  ;;  %v3612_v34 = vld [vmem:[%s4924_s1 + $0x410] ss:$8 sps:$4 sm:$0xff]  }
  0xcd   :  { %2468 = vmatprep.subr.bf16.mxu0 %v3529_v35  ;;  %v3615_v35 = vld [vmem:[%s4924_s1 + $0x910] ss:$8 sps:$4 sm:$0xff]  }
  0xcf   :  { %2264 = vmatpush1.bf16.msra.mxu1 %v3524_v36  ;;  %v3620_v36 = vld [vmem:[%s4924_s1 + $0x424] ss:$8 sps:$4 sm:$0xff]  }
  0xd0   :  { %2469 = vmatpush1.bf16.msra.mxu0 %v3527_v37  ;;  %2265 = vmatprep.subr.bf16.mxu1 %v3532_v38  ;;  %v3623_v37 = vld [vmem:[%s4924_s1 + $0x924] ss:$8 sps:$4 sm:$0xff]   ;;  %v3618_v38 = vld [vmem:[%s4924_s1 + $0x420] ss:$8 sps:$4 sm:$0xff]  }
  0xd1   :  { %2470 = vmatprep.subr.bf16.mxu0 %v3535_v39  ;;  %v3621_v39 = vld [vmem:[%s4924_s1 + $0x920] ss:$8 sps:$4 sm:$0xff]  }
  0xd3   :  { %2266 = vmatpush1.bf16.msra.mxu1 %v3530_v40  ;;  %v3626_v40 = vld [vmem:[%s4924_s1 + $0x434] ss:$8 sps:$4 sm:$0xff]  }
  0xd4   :  { %2471 = vmatpush1.bf16.msra.mxu0 %v3533_v41  ;;  %2267 = vmatprep.subr.bf16.mxu1 %v3538_v42  ;;  %v3629_v41 = vld [vmem:[%s4924_s1 + $0x934] ss:$8 sps:$4 sm:$0xff]   ;;  %v3624_v42 = vld [vmem:[%s4924_s1 + $0x430] ss:$8 sps:$4 sm:$0xff]  }
  0xd5   :  { %2472 = vmatprep.subr.bf16.mxu0 %v3541_v43  ;;  %v3627_v43 = vld [vmem:[%s4924_s1 + $0x930] ss:$8 sps:$4 sm:$0xff]  }
  0xd7   :  { %2268 = vmatpush1.bf16.msra.mxu1 %v3536_v44  ;;  %v3632_v44 = vld [vmem:[%s4924_s1 + $0x444] ss:$8 sps:$4 sm:$0xff]  }
  0xd8   :  { %2473 = vmatpush1.bf16.msra.mxu0 %v3539_v45  ;;  %2269 = vmatprep.subr.bf16.mxu1 %v3544_v46  ;;  %v3635_v45 = vld [vmem:[%s4924_s1 + $0x944] ss:$8 sps:$4 sm:$0xff]   ;;  %v3630_v46 = vld [vmem:[%s4924_s1 + $0x440] ss:$8 sps:$4 sm:$0xff]  }
  0xd9   :  { %2474 = vmatprep.subr.bf16.mxu0 %v3547_v47  ;;  %v3633_v47 = vld [vmem:[%s4924_s1 + $0x940] ss:$8 sps:$4 sm:$0xff]  }
  0xdb   :  { %2270 = vmatpush1.bf16.msra.mxu1 %v3542_v48  ;;  %v3638_v48 = vld [vmem:[%s4924_s1 + $0x454] ss:$8 sps:$4 sm:$0xff]  }
  0xdc   :  { %2475 = vmatpush1.bf16.msra.mxu0 %v3545_v49  ;;  %2271 = vmatprep.subr.bf16.mxu1 %v3550_v50  ;;  %v3641_v49 = vld [vmem:[%s4924_s1 + $0x954] ss:$8 sps:$4 sm:$0xff]   ;;  %v3636_v50 = vld [vmem:[%s4924_s1 + $0x450] ss:$8 sps:$4 sm:$0xff]  }
  0xdd   :  { %2476 = vmatprep.subr.bf16.mxu0 %v3553_v51  ;;  %v3639_v51 = vld [vmem:[%s4924_s1 + $0x950] ss:$8 sps:$4 sm:$0xff]  }
  0xdf   :  { %2272 = vmatpush1.bf16.msra.mxu1 %v3548_v52  ;;  %v3644_v52 = vld [vmem:[%s4924_s1 + $0x464] ss:$8 sps:$4 sm:$0xff]  }
  0xe0   :  { %2477 = vmatpush1.bf16.msra.mxu0 %v3551_v53  ;;  %2273 = vmatprep.subr.bf16.mxu1 %v3556_v54  ;;  %v3647_v53 = vld [vmem:[%s4924_s1 + $0x964] ss:$8 sps:$4 sm:$0xff]   ;;  %v3642_v54 = vld [vmem:[%s4924_s1 + $0x460] ss:$8 sps:$4 sm:$0xff]  }
  0xe1   :  { %2478 = vmatprep.subr.bf16.mxu0 %v3559_v55  ;;  %v3645_v55 = vld [vmem:[%s4924_s1 + $0x960] ss:$8 sps:$4 sm:$0xff]  }
  0xe3   :  { %2274 = vmatpush1.bf16.msra.mxu1 %v3554_v56  ;;  %v3650_v56 = vld [vmem:[%s4924_s1 + $0x474] ss:$8 sps:$4 sm:$0xff]  }
  0xe4   :  { %2479 = vmatpush1.bf16.msra.mxu0 %v3557_v57  ;;  %2275 = vmatprep.subr.bf16.mxu1 %v3562_v58  ;;  %v3653_v57 = vld [vmem:[%s4924_s1 + $0x974] ss:$8 sps:$4 sm:$0xff]   ;;  %v3648_v58 = vld [vmem:[%s4924_s1 + $0x470] ss:$8 sps:$4 sm:$0xff]  }
  0xe5   :  { %2480 = vmatprep.subr.bf16.mxu0 %v3565_v59  ;;  %v3651_v59 = vld [vmem:[%s4924_s1 + $0x970] ss:$8 sps:$4 sm:$0xff]  }
  0xe7   :  { %2276 = vmatpush1.bf16.msra.mxu1 %v3560_v60  ;;  %v3656_v60 = vld [vmem:[%s4924_s1 + $0x484] ss:$8 sps:$4 sm:$0xff]  }
  0xe8   :  { %2481 = vmatpush1.bf16.msra.mxu0 %v3563_v61  ;;  %2277 = vmatprep.subr.bf16.mxu1 %v3568_v62  ;;  %v3659_v61 = vld [vmem:[%s4924_s1 + $0x984] ss:$8 sps:$4 sm:$0xff]   ;;  %v3654_v62 = vld [vmem:[%s4924_s1 + $0x480] ss:$8 sps:$4 sm:$0xff]  }
  0xe9   :  { %2482 = vmatprep.subr.bf16.mxu0 %v3571_v63  ;;  %v3657_v63 = vld [vmem:[%s4924_s1 + $0x980] ss:$8 sps:$4 sm:$0xff]  }
  0xeb   :  { %2278 = vmatpush1.bf16.msra.mxu1 %v3566_v0  ;;  %v3662_v0 = vld [vmem:[%s4924_s1 + $0x494] ss:$8 sps:$4 sm:$0xff]  }
  0xec   :  { %2483 = vmatpush1.bf16.msra.mxu0 %v3569_v1  ;;  %2279 = vmatprep.subr.bf16.mxu1 %v3574_v2  ;;  %v3665_v1 = vld [vmem:[%s4924_s1 + $0x994] ss:$8 sps:$4 sm:$0xff]   ;;  %v3660_v2 = vld [vmem:[%s4924_s1 + $0x490] ss:$8 sps:$4 sm:$0xff]  }
  0xed   :  { %2484 = vmatprep.subr.bf16.mxu0 %v3577_v3  ;;  %v3663_v3 = vld [vmem:[%s4924_s1 + $0x990] ss:$8 sps:$4 sm:$0xff]  }
  0xef   :  { %2280 = vmatpush1.bf16.msra.mxu1 %v3572_v4  ;;  %v3668_v4 = vld [vmem:[%s4924_s1 + $0x4a4] ss:$8 sps:$4 sm:$0xff]  }
  0xf0   :  { %2485 = vmatpush1.bf16.msra.mxu0 %v3575_v5  ;;  %2281 = vmatprep.subr.bf16.mxu1 %v3580_v6  ;;  %v3671_v5 = vld [vmem:[%s4924_s1 + $0x9a4] ss:$8 sps:$4 sm:$0xff]   ;;  %v3666_v6 = vld [vmem:[%s4924_s1 + $0x4a0] ss:$8 sps:$4 sm:$0xff]  }
  0xf1   :  { %2486 = vmatprep.subr.bf16.mxu0 %v3583_v7  ;;  %v3669_v7 = vld [vmem:[%s4924_s1 + $0x9a0] ss:$8 sps:$4 sm:$0xff]  }
  0xf3   :  { %2282 = vmatpush1.bf16.msra.mxu1 %v3578_v8  ;;  %v3674_v8 = vld [vmem:[%s4924_s1 + $0x4b4] ss:$8 sps:$4 sm:$0xff]  }
  0xf4   :  { %2487 = vmatpush1.bf16.msra.mxu0 %v3581_v9  ;;  %2283 = vmatprep.subr.bf16.mxu1 %v3586_v10  ;;  %v3677_v9 = vld [vmem:[%s4924_s1 + $0x9b4] ss:$8 sps:$4 sm:$0xff]   ;;  %v3672_v10 = vld [vmem:[%s4924_s1 + $0x4b0] ss:$8 sps:$4 sm:$0xff]  }
  0xf5   :  { %2488 = vmatprep.subr.bf16.mxu0 %v3589_v11  ;;  %v3675_v11 = vld [vmem:[%s4924_s1 + $0x9b0] ss:$8 sps:$4 sm:$0xff]  }
  0xf7   :  { %2284 = vmatpush1.bf16.msra.mxu1 %v3584_v12  ;;  %v3680_v12 = vld [vmem:[%s4924_s1 + $0x4c4] ss:$8 sps:$4 sm:$0xff]  }
  0xf8   :  { %2489 = vmatpush1.bf16.msra.mxu0 %v3587_v13  ;;  %2285 = vmatprep.subr.bf16.mxu1 %v3592_v14  ;;  %v3683_v13 = vld [vmem:[%s4924_s1 + $0x9c4] ss:$8 sps:$4 sm:$0xff]   ;;  %v3678_v14 = vld [vmem:[%s4924_s1 + $0x4c0] ss:$8 sps:$4 sm:$0xff]  }
  0xf9   :  { %2490 = vmatprep.subr.bf16.mxu0 %v3595_v15  ;;  %v3681_v15 = vld [vmem:[%s4924_s1 + $0x9c0] ss:$8 sps:$4 sm:$0xff]  }
  0xfb   :  { %2286 = vmatpush1.bf16.msra.mxu1 %v3590_v16  ;;  %v3686_v16 = vld [vmem:[%s4924_s1 + $0x4d4] ss:$8 sps:$4 sm:$0xff]  }
  0xfc   :  { %2491 = vmatpush1.bf16.msra.mxu0 %v3593_v17  ;;  %2287 = vmatprep.subr.bf16.mxu1 %v3598_v19  ;;  %v3689_v17 = vld [vmem:[%s4924_s1 + $0x9d4] ss:$8 sps:$4 sm:$0xff]   ;;  %v3684_v19 = vld [vmem:[%s4924_s1 + $0x4d0] ss:$8 sps:$4 sm:$0xff]  }
  0xfd   :  { %2492 = vmatprep.subr.bf16.mxu0 %v3601_v21  ;;  %v3687_v21 = vld [vmem:[%s4924_s1 + $0x9d0] ss:$8 sps:$4 sm:$0xff]  }
  0xff   :  { %2288 = vmatpush1.bf16.msra.mxu1 %v3596_v22  ;;  %v3692_v22 = vld [vmem:[%s4924_s1 + $0x4e4] ss:$8 sps:$4 sm:$0xff]  }
 0x100   :  { %2493 = vmatpush1.bf16.msra.mxu0 %v3599_v23  ;;  %2298 = vmatprep.subr.bf16.mxu1 %v3606_v26  ;;  %v3695_v23 = vld [vmem:[%s4924_s1 + $0x9e4] ss:$8 sps:$4 sm:$0xff]   ;;  %v3690_v26 = vld [vmem:[%s4924_s1 + $0x4e0] ss:$8 sps:$4 sm:$0xff]  }
 0x101   :  { %2503 = vmatprep.subr.bf16.mxu0 %v3611_v18  ;;  %v3693_v18 = vld [vmem:[%s4924_s1 + $0x9e0] ss:$8 sps:$4 sm:$0xff]  }
 0x102   :  { %2290 = vmatmul.mubr.bf16.vlgmr.msra.gmra.mrb[0].mxu1 %v2775_v20  ;;  %v3698_v20 = vld [vmem:[%s4924_s1 + $0x4f4] ss:$8 sps:$4 sm:$0xff]  }
 0x103   :  { %2495 = vmatmul.mubr.bf16.vlgmr.msra.gmra.mrb[0].mxu0 %v2785_v27  ;;  %2299 = vmatpush1.bf16.msra.mxu1 %v3604_v30  ;;  %v3701_v27 = vld [vmem:[%s4924_s1 + $0x9f4] ss:$8 sps:$4 sm:$0xff]   ;;  %v3696_v30 = vld [vmem:[%s4924_s1 + $0x4f0] ss:$8 sps:$4 sm:$0xff]  }
 0x104   :  { %2504 = vmatpush1.bf16.msra.mxu0 %v3609_v24  ;;  %2300 = vmatprep.subr.bf16.mxu1 %v3614_v25  ;;  %v3699_v24 = vld [vmem:[%s4924_s1 + $0x9f0] ss:$8 sps:$4 sm:$0xff]   ;;  %v3708_v25 = vld [vmem:[%s4924_s1 + $0xa04] ss:$8 sps:$4 sm:$0xff]  }
 0x105   :  { %2505 = vmatprep.subr.bf16.mxu0 %v3617_v31  ;;  %2330 = vmatprep.mubr.bf16.mxu1 %v2778_v32  ;;  %v2777_v31 = vcombine.low %v4615_v28, %v4615_v28  ;;  %v2787_v32 = vcombine.low %v4620_v29, %v4620_v29  ;;  %v3709_v28 = vld [vmem:[%s4924_s1 + $0xa10] ss:$8 sps:$4 sm:$0xff]   ;;  %v3714_v29 = vld [vmem:[%s4924_s1 + $0xa24] ss:$8 sps:$4 sm:$0xff]  }
 0x106   :  { %2535 = vmatprep.mubr.bf16.mxu0 %v2788_v33  ;;  %v3706_v33 = vld [vmem:[%s4924_s1 + $0xa00] ss:$8 sps:$4 sm:$0xff]  }
 0x107   :  { %2301 = vmatpush1.bf16.msra.mxu1 %v3612_v34  ;;  %v3711_v34 = vld [vmem:[%s4924_s1 + $0xa14] ss:$8 sps:$4 sm:$0xff]  }
 0x108   :  { %2506 = vmatpush1.bf16.msra.mxu0 %v3615_v35  ;;  %2302 = vmatprep.subr.bf16.mxu1 %v3620_v36  ;;  %v3747_v35 = vmov 0   ;;  %v3712_v36 = vld [vmem:[%s4924_s1 + $0xa20] ss:$8 sps:$4 sm:$0xff]  }
 0x109   :  { %2507 = vmatprep.subr.bf16.mxu0 %v3623_v37  ;;  %v3717_v37 = vld [vmem:[%s4924_s1 + $0xa34] ss:$8 sps:$4 sm:$0xff]  }
 0x10b   :  { %2303 = vmatpush1.bf16.msra.mxu1 %v3618_v38  ;;  %v3715_v38 = vld [vmem:[%s4924_s1 + $0xa30] ss:$8 sps:$4 sm:$0xff]  }
 0x10c   :  { %2508 = vmatpush1.bf16.msra.mxu0 %v3621_v39  ;;  %2304 = vmatprep.subr.bf16.mxu1 %v3626_v40  ;;  %v3720_v39 = vld [vmem:[%s4924_s1 + $0xa44] ss:$8 sps:$4 sm:$0xff]   ;;  %v3718_v40 = vld [vmem:[%s4924_s1 + $0xa40] ss:$8 sps:$4 sm:$0xff]  }
 0x10d   :  { %2509 = vmatprep.subr.bf16.mxu0 %v3629_v41  ;;  %v3723_v41 = vld [vmem:[%s4924_s1 + $0xa54] ss:$8 sps:$4 sm:$0xff]  }
 0x10f   :  { %2305 = vmatpush1.bf16.msra.mxu1 %v3624_v42  ;;  %v3721_v42 = vld [vmem:[%s4924_s1 + $0xa50] ss:$8 sps:$4 sm:$0xff]  }
 0x110   :  { %2510 = vmatpush1.bf16.msra.mxu0 %v3627_v43  ;;  %2306 = vmatprep.subr.bf16.mxu1 %v3632_v44  ;;  %v3726_v43 = vld [vmem:[%s4924_s1 + $0xa64] ss:$8 sps:$4 sm:$0xff]   ;;  %v3724_v44 = vld [vmem:[%s4924_s1 + $0xa60] ss:$8 sps:$4 sm:$0xff]  }
 0x111   :  { %2511 = vmatprep.subr.bf16.mxu0 %v3635_v45  ;;  %v3729_v45 = vld [vmem:[%s4924_s1 + $0xa74] ss:$8 sps:$4 sm:$0xff]  }
 0x113   :  { %2307 = vmatpush1.bf16.msra.mxu1 %v3630_v46  ;;  %v3727_v46 = vld [vmem:[%s4924_s1 + $0xa70] ss:$8 sps:$4 sm:$0xff]  }
 0x114   :  { %2512 = vmatpush1.bf16.msra.mxu0 %v3633_v47  ;;  %2308 = vmatprep.subr.bf16.mxu1 %v3638_v48  ;;  %v3730_v47 = vld [vmem:[%s4925_s0 + $0x50] ss:$0 sps:$4 sm:$0xff]   ;;  %v3731_v48 = vld [vmem:[%s4926_s3 + $0x40] sm:$0xff]  }
 0x115   :  { %2513 = vmatprep.subr.bf16.mxu0 %v3641_v49  ;;  %v3732_v49 = vld [vmem:[%s4926_s3] sm:$0xff]  }
 0x117   :  { %2309 = vmatpush1.bf16.msra.mxu1 %v3636_v50  ;;  %v3733_v50 = vld [vmem:[%s4926_s3 + $0x48] sm:$0xff]  }
 0x118   :  { %2514 = vmatpush1.bf16.msra.mxu0 %v3639_v51  ;;  %2310 = vmatprep.subr.bf16.mxu1 %v3644_v52  ;;  %v3734_v51 = vld [vmem:[%s4926_s3 + $0x8] sm:$0xff]   ;;  %v3735_v52 = vld [vmem:[%s4926_s3 + $0x50] sm:$0xff]  }
 0x119   :  { %2515 = vmatprep.subr.bf16.mxu0 %v3647_v53  ;;  %v3736_v53 = vld [vmem:[%s4926_s3 + $0x10] sm:$0xff]  }
 0x11b   :  { %2311 = vmatpush1.bf16.msra.mxu1 %v3642_v54  ;;  %v3737_v54 = vld [vmem:[%s4926_s3 + $0x58] sm:$0xff]  }
 0x11c   :  { %2516 = vmatpush1.bf16.msra.mxu0 %v3645_v55  ;;  %2312 = vmatprep.subr.bf16.mxu1 %v3650_v56  ;;  %v3738_v55 = vld [vmem:[%s4926_s3 + $0x18] sm:$0xff]   ;;  %v3739_v56 = vld [vmem:[%s4926_s3 + $0x60] sm:$0xff]  }
 0x11d   :  { %2517 = vmatprep.subr.bf16.mxu0 %v3653_v57  ;;  %v3740_v57 = vld [vmem:[%s4926_s3 + $0x20] sm:$0xff]  }
 0x11f   :  { %2313 = vmatpush1.bf16.msra.mxu1 %v3648_v58  ;;  %v3741_v58 = vld [vmem:[%s4926_s3 + $0x68] sm:$0xff]  }
 0x120   :  { %2518 = vmatpush1.bf16.msra.mxu0 %v3651_v59  ;;  %2314 = vmatprep.subr.bf16.mxu1 %v3656_v60  ;;  %v3742_v59 = vld [vmem:[%s4926_s3 + $0x28] sm:$0xff]   ;;  %v3743_v60 = vld [vmem:[%s4926_s3 + $0x70] sm:$0xff]  }
 0x121   :  { %2519 = vmatprep.subr.bf16.mxu0 %v3659_v61  ;;  %v3744_v61 = vld [vmem:[%s4926_s3 + $0x30] sm:$0xff]  }
 0x123   :  { %2315 = vmatpush1.bf16.msra.mxu1 %v3654_v62  ;;  %v3745_v62 = vld [vmem:[%s4926_s3 + $0x78] sm:$0xff]  }
 0x124   :  { %2520 = vmatpush1.bf16.msra.mxu0 %v3657_v63  ;;  %2316 = vmatprep.subr.bf16.mxu1 %v3662_v0  ;;  %v3746_v63 = vld [vmem:[%s4926_s3 + $0x38] sm:$0xff]  }
 0x125   :  { %2521 = vmatprep.subr.bf16.mxu0 %v3665_v1 }
 0x127   :  { %2317 = vmatpush1.bf16.msra.mxu1 %v3660_v2 }
 0x128   :  { %2522 = vmatpush1.bf16.msra.mxu0 %v3663_v3  ;;  %2318 = vmatprep.subr.bf16.mxu1 %v3668_v4  ;;  %v370_v4 = vlaneseq }
 0x129   :  { %2523 = vmatprep.subr.bf16.mxu0 %v3671_v5 }
 0x12a   :  { %v371_v5 = vshrl.u32 %v370_v4, 7 }
 0x12b   :  { %2319 = vmatpush1.bf16.msra.mxu1 %v3666_v6 }
 0x12c   :  { %2524 = vmatpush1.bf16.msra.mxu0 %v3669_v7  ;;  %2320 = vmatprep.subr.bf16.mxu1 %v3674_v8  ;;  %v372_v6 = vsub.s32 0, %v371_v5  ;;  %v368_v7 = vld [vmem:[%s4927_s2] sm:$0x3]  ;;  %v376_v8 = vsub.s32 1, %v371_v5 }
 0x12d   :  { %2525 = vmatprep.subr.bf16.mxu0 %v3677_v9 }
 0x12e   :  { %v373_v9 = vrot.slane %v368_v7, %v372_v6 }
 0x12f   :  { %2321 = vmatpush1.bf16.msra.mxu1 %v3672_v10  ;;  %v377_v10 = vrot.slane %v368_v7, %v376_v8 }
 0x130   :  { %2526 = vmatpush1.bf16.msra.mxu0 %v3675_v11  ;;  %2322 = vmatprep.subr.bf16.mxu1 %v3680_v12 }
 0x131   :  { %2527 = vmatprep.subr.bf16.mxu0 %v3683_v13 }
 0x133   :  { %2323 = vmatpush1.bf16.msra.mxu1 %v3678_v14 }
 0x134   :  { %2528 = vmatpush1.bf16.msra.mxu0 %v3681_v15  ;;  %2324 = vmatprep.subr.bf16.mxu1 %v3686_v16 }
 0x135   :  { %2529 = vmatprep.subr.bf16.mxu0 %v3689_v17 }
 0x137   :  { %2325 = vmatpush1.bf16.msra.mxu1 %v3684_v19 }
 0x138   :  { %2530 = vmatpush1.bf16.msra.mxu0 %v3687_v21  ;;  %2326 = vmatprep.subr.bf16.mxu1 %v3692_v22 }
 0x139   :  { %2531 = vmatprep.subr.bf16.mxu0 %v3695_v23 }
 0x13b   :  { %2327 = vmatpush1.bf16.msra.mxu1 %v3690_v26 }
 0x13c   :  { %2532 = vmatpush1.bf16.msra.mxu0 %v3693_v18  ;;  %2328 = vmatprep.subr.bf16.mxu1 %v3698_v20  ;;  %v3126_v20 = vld [vmem:[%s4928_s4] ss:$0 sm:$0xff] }
 0x13d   :  { %2533 = vmatprep.subr.bf16.mxu0 %v3701_v27 }
 0x13f   :  { %2329 = vmatpush1.bf16.msra.mxu1 %v3696_v30 }
 0x140   :  { %2534 = vmatpush1.bf16.msra.mxu0 %v3699_v24  ;;  %3143 = vmatprep.subr.bf16.mxu1 %v3731_v48 }
 0x141   :  { %2544 = vmatprep.subr.bf16.mxu0 %v3708_v25 }
 0x142   :  { %2331 = vmatmul.mubr.bf16.vlgmr.msra.gmra.mrb[0].mxu1 %v2777_v31 }
 0x143   :  { %2536 = vmatmul.mubr.bf16.vlgmr.msra.gmra.mrb[0].mxu0 %v2787_v32  ;;  %3144 = vmatpush3.bf16.msra.mxu1 %v3732_v49 }
 0x144   :  { %2545 = vmatpush1.bf16.msra.mxu0 %v3706_v33  ;;  %2576 = vmatprep.mubr.bf16.mxu0 %v3747_v35 }
 0x145   :  { %2546 = vmatprep.subr.bf16.mxu0 %v3711_v34  ;;  %3145 = vmatprep.subr.bf16.mxu1 %v3733_v50 }
 0x147   :  { %3146 = vmatpush3.bf16.msra.mxu1 %v3734_v51 }
 0x148   :  { %2547 = vmatpush1.bf16.msra.mxu0 %v3709_v28  ;;  %3147 = vmatprep.subr.bf16.mxu1 %v3735_v52 }
 0x149   :  { %2548 = vmatprep.subr.bf16.mxu0 %v3714_v29 }
 0x14b   :  { %3148 = vmatpush3.bf16.msra.mxu1 %v3736_v53 }
 0x14c   :  { %2549 = vmatpush1.bf16.msra.mxu0 %v3712_v36  ;;  %3149 = vmatprep.subr.bf16.mxu1 %v3737_v54 }
 0x14d   :  { %2550 = vmatprep.subr.bf16.mxu0 %v3717_v37 }
 0x14f   :  { %3150 = vmatpush3.bf16.msra.mxu1 %v3738_v55 }
 0x150   :  { %2551 = vmatpush1.bf16.msra.mxu0 %v3715_v38  ;;  %3151 = vmatprep.subr.bf16.mxu1 %v3739_v56 }
 0x151   :  { %2552 = vmatprep.subr.bf16.mxu0 %v3720_v39 }
 0x153   :  { %3152 = vmatpush3.bf16.msra.mxu1 %v3740_v57 }
 0x154   :  { %2553 = vmatpush1.bf16.msra.mxu0 %v3718_v40  ;;  %3153 = vmatprep.subr.bf16.mxu1 %v3741_v58 }
 0x155   :  { %2554 = vmatprep.subr.bf16.mxu0 %v3723_v41 }
 0x157   :  { %3154 = vmatpush3.bf16.msra.mxu1 %v3742_v59 }
 0x158   :  { %2555 = vmatpush1.bf16.msra.mxu0 %v3721_v42  ;;  %3155 = vmatprep.subr.bf16.mxu1 %v3743_v60 }
 0x159   :  { %2556 = vmatprep.subr.bf16.mxu0 %v3726_v43 }
 0x15b   :  { %3156 = vmatpush3.bf16.msra.mxu1 %v3744_v61 }
 0x15c   :  { %2557 = vmatpush1.bf16.msra.mxu0 %v3724_v44  ;;  %3157 = vmatprep.subr.bf16.mxu1 %v3745_v62 }
 0x15d   :  { %2558 = vmatprep.subr.bf16.mxu0 %v3729_v45 }
 0x15f   :  { %3158 = vmatpush3.bf16.msra.mxu1 %v3746_v63 }
 0x160   :  { %2559 = vmatpush1.bf16.msra.mxu0 %v3727_v46 }
 0x163   :  { %2577 = vmatmul.mubr.bf16.vlgmr.msra.gmra.mrb[0].mxu0 %v3730_v47 }
 0x215   :  { %v2332_v0 = vpop.f32.mrb[0].mxu1 }
 0x216   :  { %v2334_v1 = vpop.f32.mrb[1].mxu1  ;;  %v3165_v11 = vadd.f32 %v2332_v0, %v373_v9 }
 0x217   :  { %v2336_v2 = vpop.f32.mrb[2].mxu1  ;;  %v3167_v12 = vadd.f32 %v2334_v1, %v377_v10 }
 0x218   :  { %v2337_v3 = vpop.f32.mrb[3].mxu1 }
 0x236   :  { %v2578_v13 = vpop.f32.mrb[0].mxu0 }
 0x237   :  { %v3166_v14 = vadd.f32 %v3165_v11, %v2578_v13  ;;  %v2580_v15 = vpop.f32.mrb[1].mxu0 }
 0x238   :  { %v3168_v16 = vadd.f32 %v3167_v12, %v2580_v15  ;;  %v2582_v17 = vpop.f32.mrb[2].mxu0 }
 0x239   :  { %v2585_v19 = vmax.f32 %v3166_v14, 0.0  ;;  %v2583_v21 = vpop.f32.mrb[3].mxu0 }
 0x23a   :  { %v2586_v22 = vmax.f32 %v3168_v16, 0.0 }
 0x23b   :  { %v2587_v26 = vpack.c.bf16 %v2585_v19, %v2585_v19 }
 0x23c   :  { %v2588_v23 = vpack.c.bf16 %v2586_v22, %v2586_v22 }
 0x23e   :  { %2756 = vmatprep.mubr.bf16.mxu1 %v2588_v23 }
 0x23f   :  { %2757 = vmatmul.mubr.bf16.vlgmr.msra.gmra.mrb[4].mxu1 %v2587_v26 }
 0x312   :  { %v3159_v18 = vpop.f32.mrb[4].mxu1 }
 0x313   :  { %v3160_v27 = vpop.f32.mrb[5].mxu1 }
 0x314   :  { %v3161_v30 = vadd.f32 %v3160_v27, %v3159_v18  ;;  %v3162_v24 = vpop.f32.mrb[6].mxu1 }
 0x315   :  { %v3163_v25 = vpop.f32.mrb[7].mxu1 }
 0x316   :  { %v2759_v31 = vadd.f32 %v3161_v30, %v3126_v20 }
 0x318   :  { %2764 = vst [vmem:[%s4929_s5] sm:$0xff] %v2759_v31 }

</bundles_post_ra>
